<compile_context>
chip_gen: v6e
topology: v6e:2x2x1
jax: 0.10.0
libtpu: 0.0.40
codegen_flags: <defaults>
</compile_context>

<pallas_src>
import functools
import math

import jax
import jax.numpy as jnp
from jax.experimental import pallas as pl
from jax.experimental.pallas import tpu as pltpu


# ----------------------------------------------------------------------------
# Chip detection for the bf16-exp micro-opt (v6e/v7x EUP has bf16; v5e does not).
# ----------------------------------------------------------------------------
def _eup_has_bf16():
    try:
        kind = jax.devices()[0].device_kind.lower()
    except Exception:
        return False
    return any(tag in kind for tag in ("v6", "v7", "7x"))


_EXP_BF16 = _eup_has_bf16()


# ----------------------------------------------------------------------------
# Kernel 1: fused q/k/v projection  y = x @ W_qkv^T   (bf16 x bf16 -> f32 acc -> bf16 out)
# ----------------------------------------------------------------------------
def _qkv_proj_kernel(x_ref, wt_ref, o_ref, acc_ref):
    @pl.when(pl.program_id(2) == 0)
    def _init():
        acc_ref[...] = jnp.zeros_like(acc_ref)

    acc_ref[...] += jnp.dot(x_ref[...], wt_ref[...],
                            preferred_element_type=jnp.float32)

    @pl.when(pl.program_id(2) == pl.num_programs(2) - 1)
    def _store():
        o_ref[...] = acc_ref[...].astype(o_ref.dtype)


def _pick_tile(dim, cap, aligns):
    """Largest tile <= cap dividing `dim`; tries the alignments in order (largest first)."""
    if dim <= cap:
        return dim
    for align in aligns:
        t = (cap // align) * align
        while t >= align:
            if dim % t == 0:
                return t
            t -= align
    # TODO(synk): pathological (prime-ish) dims fall back to the full extent; prefer a pl.cdiv
    # grid with padding/masking if such shapes ever show up in production.
    return dim


def prepare_qkv_weight(wq, wk, wv):
    """One-time weight prep (outside the hot path): concat q/k/v, transpose, cast to bf16."""
    w = jnp.concatenate([wq, wk, wv], axis=0)        # (Ntot, d_model)
    return jnp.transpose(w).astype(jnp.bfloat16)     # (d_model, Ntot)


def fused_qkv_projection(x2d_bf16, wt_bf16):
    """x2d: (M, K) bf16, wt: (K, Ntot) bf16 -> (M, Ntot) bf16."""
    M, K = x2d_bf16.shape
    N = wt_bf16.shape[1]
    tm = _pick_tile(M, 512, (256, 128, 16, 8))       # 16-multiple min for bf16 sublane packing
    tn = _pick_tile(N, 512, (256, 128))              # 256 matches v6e/v7x MXU, 128 matches v5e
    tk = _pick_tile(K, 1024, (256, 128))
    grid = (M // tm, N // tn, K // tk)
    cost = pl.CostEstimate(flops=2 * M * N * K, transcendentals=0,
                           bytes_accessed=2 * (M * K + K * N + M * N))
    return pl.pallas_call(
        _qkv_proj_kernel,
        out_shape=jax.ShapeDtypeStruct((M, N), jnp.bfloat16),
        grid=grid,
        in_specs=[pl.BlockSpec((tm, tk), lambda i, j, k: (i, k)),
                  pl.BlockSpec((tk, tn), lambda i, j, k: (k, j))],
        out_specs=pl.BlockSpec((tm, tn), lambda i, j, k: (i, j)),
        scratch_shapes=[pltpu.VMEM((tm, tn), jnp.float32)],
        compiler_params=pltpu.CompilerParams(
            dimension_semantics=("parallel", "parallel", "arbitrary"),
            vmem_limit_bytes=32 * 1024 * 1024),
        cost_estimate=cost,
    )(x2d_bf16, wt_bf16)


# ----------------------------------------------------------------------------
# Kernel 2: flash-style RMSNorm + RoPE + causal attention.
#   grid = (B, T//tile, T//tile); per (batch, q-tile) the KV axis is an online-softmax reduction.
# ----------------------------------------------------------------------------
def _attn_kernel(q_blk_ref, kv_blk_ref, cos_q_ref, sin_q_ref, cos_k_ref, sin_k_ref,
                 o_ref, q_sc, acc_sc, m_sc, l_sc, *,
                 n_heads, n_kv_heads, d_head, n_rep, scale, eps, tile, exp_bf16):
    D = d_head
    d2 = D // 2
    nq = n_heads * D
    nk = n_kv_heads * D

    qi = pl.program_id(1)
    kv = pl.program_id(2)

    def rmsnorm(x):
        return x * jax.lax.rsqrt(jnp.mean(x * x, axis=-1, keepdims=True) + eps)

    def rope(x, cos, sin):
        # y = x * [cos|cos] + [x2|x1] * [sin|-sin]   (== apply_rotary_emb of the reference)
        if D % 128 == 0:
            x_rot = pltpu.roll(x, shift=d2, axis=-1)          # XLU slot: half-swap is free
        else:
            x_rot = jnp.concatenate([x[:, d2:], x[:, :d2]], axis=-1)
        return x * cos + x_rot * sin

    # ---- once per q tile (kv == 0): normalize + rope + scale q, init online-softmax state ----
    @pl.when(kv == 0)
    def _init():
        cos_q = cos_q_ref[...].astype(jnp.float32)
        sin_q = sin_q_ref[...].astype(jnp.float32)
        for h in range(n_heads):
            q_h = q_blk_ref[0, :, h * D:(h + 1) * D].astype(jnp.float32)
            q_h = rope(rmsnorm(q_h), cos_q, sin_q) * scale    # fold 1/sqrt(D) into q
            q_sc[:, h * D:(h + 1) * D] = q_h.astype(jnp.bfloat16)
        acc_sc[...] = jnp.zeros_like(acc_sc)
        m_sc[...] = jnp.full_like(m_sc, -jnp.inf)
        l_sc[...] = jnp.zeros_like(l_sc)

    # ---- per KV block at/below the causal diagonal (blocks above it are skipped entirely) ----
    @pl.when(kv <= qi)
    def _compute():
        cos_k = cos_k_ref[...].astype(jnp.float32)
        sin_k = sin_k_ref[...].astype(jnp.float32)

        # within-tile causal mask (binding only on the diagonal block kv == qi)
        row = jax.lax.broadcasted_iota(jnp.int32, (tile, tile), 0)
        col = jax.lax.broadcasted_iota(jnp.int32, (tile, tile), 1)
        allow = col <= row + (qi - kv) * tile

        for h in range(n_heads):
            g = h // n_rep
            k_h = kv_blk_ref[0, :, nq + g * D:nq + (g + 1) * D].astype(jnp.float32)
            v_h = kv_blk_ref[0, :, nq + nk + g * D:nq + nk + (g + 1) * D]   # bf16
            k_h = rope(rmsnorm(k_h), cos_k, sin_k).astype(jnp.bfloat16)
            q_h = q_sc[:, h * D:(h + 1) * D]                                # bf16, pre-scaled

            # scores: bf16 operands, f32 accumulation (contract last dims -> no k transpose copy)
            s = jax.lax.dot_general(q_h, k_h, (((1,), (1,)), ((), ())),
                                    preferred_element_type=jnp.float32)    # (tile, tile)
            s = jnp.where(allow, s, -jnp.inf)

            m_prev = m_sc[h]                                                # (tile, 1)
            m_new = jnp.maximum(m_prev, jnp.max(s, axis=-1, keepdims=True))
            alpha = jnp.exp(m_prev - m_new)
            s_shift = s - m_new
            if exp_bf16:                                                    # v6e/v7x EUP bf16
                p_lo = jnp.exp(s_shift.astype(jnp.bfloat16))
                p_f32 = p_lo.astype(jnp.float32)
            else:                                                           # v5e: keep f32
                p_f32 = jnp.exp(s_shift)
                p_lo = p_f32.astype(jnp.bfloat16)

            l_sc[h] = alpha * l_sc[h] + jnp.sum(p_f32, axis=-1, keepdims=True)
            m_sc[h] = m_new

            pv = jnp.dot(p_lo, v_h, preferred_element_type=jnp.float32)    # (tile, D)
            acc_sc[:, h * D:(h + 1) * D] = alpha * acc_sc[:, h * D:(h + 1) * D] + pv

    # ---- diagonal block = last relevant KV block: normalize and do ONE full-width store ----
    @pl.when(kv == qi)
    def _finalize():
        for h in range(n_heads):
            inv_l = pl.reciprocal(l_sc[h], approx=True)                     # EUP reciprocal
            acc_sc[:, h * D:(h + 1) * D] = acc_sc[:, h * D:(h + 1) * D] * inv_l
        o_ref[0] = acc_sc[...].astype(o_ref.dtype)


def _rotary_cache(T, d_head):
    """Matches the PyTorch Rotary module (bf16 cached cos/sin), packed as [cos|cos] / [sin|-sin]."""
    inv_freq = 1.0 / (10000.0 ** (jnp.arange(0, d_head, 2, dtype=jnp.float32) / d_head))
    freqs = jnp.outer(jnp.arange(T, dtype=jnp.float32), inv_freq)           # (T, d_head//2)
    cos = jnp.cos(freqs).astype(jnp.bfloat16)
    sin = jnp.sin(freqs).astype(jnp.bfloat16)
    cos_full = jnp.concatenate([cos, cos], axis=-1)                         # (T, d_head)
    sin_full = jnp.concatenate([sin, -sin], axis=-1)                        # (T, d_head)
    return cos_full, sin_full


# ----------------------------------------------------------------------------
# Full MixerAttention forward.
# ----------------------------------------------------------------------------
@functools.partial(jax.jit, static_argnames=("n_heads", "n_kv_heads", "expand_factor"))
def mixer_attention_forward(x, wt_fused, *, n_heads, n_kv_heads, expand_factor):
    B, T, d_model = x.shape
    d_head = d_model // n_heads * expand_factor
    n_rep = n_heads // n_kv_heads
    # TODO(synk): the reference's repeat_kv call for n_rep > 1 repeats the *sequence* axis
    # (dim=1 of a (B, T, H_kv, D) tensor); only the n_rep == 1 config is wired through here.
    assert n_rep == 1, "kernel path implemented for n_heads == n_kv_heads"

    nq = n_heads * d_head
    nk = n_kv_heads * d_head
    ntot = nq + 2 * nk
    assert wt_fused.shape == (d_model, ntot)

    # --- fused q/k/v projection (single tiled bf16 matmul kernel) ---
    x2d = x.reshape(B * T, d_model).astype(jnp.bfloat16)
    qkv = fused_qkv_projection(x2d, wt_fused).reshape(B, T, ntot)           # bf16

    # --- rotary cache (glue, tiny) ---
    cos_full, sin_full = _rotary_cache(T, d_head)

    # --- flash-style attention: square q/kv tile so the causal diagonal is the block kv == qi ---
    tile = _pick_tile(T, 256, (256, 128, 16, 8))
    n_blk = T // tile

    scale = 1.0 / math.sqrt(d_head)
    eps = float(jnp.finfo(jnp.float32).eps)
    kernel = functools.partial(_attn_kernel, n_heads=n_heads, n_kv_heads=n_kv_heads,
                               d_head=d_head, n_rep=n_rep, scale=scale, eps=eps,
                               tile=tile, exp_bf16=_EXP_BF16)

    q_spec = pl.BlockSpec((1, tile, ntot), lambda b, qi, kv: (b, qi, 0))
    kv_spec = pl.BlockSpec((1, tile, ntot),
                           lambda b, qi, kv: (b, jnp.minimum(kv, qi), 0))   # clamp -> DMA skip
    rot_q_spec = pl.BlockSpec((tile, d_head), lambda b, qi, kv: (qi, 0))
    rot_k_spec = pl.BlockSpec((tile, d_head),
                              lambda b, qi, kv: (jnp.minimum(kv, qi), 0))

    cost = pl.CostEstimate(
        flops=4 * B * n_heads * T * T * d_head,
        transcendentals=B * n_heads * T * T,
        bytes_accessed=2 * B * T * (2 * ntot + nq))

    out = pl.pallas_call(
        kernel,
        out_shape=jax.ShapeDtypeStruct((B, T, nq), jnp.bfloat16),
        grid=(B, n_blk, n_blk),
        in_specs=[q_spec, kv_spec, rot_q_spec, rot_q_spec, rot_k_spec, rot_k_spec],
        out_specs=pl.BlockSpec((1, tile, nq), lambda b, qi, kv: (b, qi, 0)),
        scratch_shapes=[pltpu.VMEM((tile, nq), jnp.bfloat16),        # roped/scaled q cache
                        pltpu.VMEM((tile, nq), jnp.float32),         # per-head output accumulator
                        pltpu.VMEM((n_heads, tile, 1), jnp.float32), # running max
                        pltpu.VMEM((n_heads, tile, 1), jnp.float32)],# running denom
        compiler_params=pltpu.CompilerParams(
            dimension_semantics=("parallel", "parallel", "arbitrary"),
            vmem_limit_bytes=32 * 1024 * 1024),
        cost_estimate=cost,
    )(qkv, qkv, cos_full, sin_full, cos_full, sin_full)

    # (B, T, n_heads*d_head) == (B, T, d_model*expand_factor): free reshape, no transpose.
    return out.reshape(B, T, d_model * expand_factor)


# ----------------------------------------------------------------------------
# Pure-JAX reference (mirrors the PyTorch forward, f32 projections) for a sanity check.
# ----------------------------------------------------------------------------
def reference_forward(x, wq, wk, wv, *, n_heads, n_kv_heads, expand_factor):
    B, T, d_model = x.shape
    d_head = d_model // n_heads * expand_factor
    q = (x.reshape(B * T, d_model) @ wq.T).reshape(B, T, n_heads, d_head)
    k = (x.reshape(B * T, d_model) @ wk.T).reshape(B, T, n_kv_heads, d_head)
    v = (x.reshape(B * T, d_model) @ wv.T).reshape(B, T, n_kv_heads, d_head)

    inv_freq = 1.0 / (10000.0 ** (jnp.arange(0, d_head, 2, dtype=jnp.float32) / d_head))
    freqs = jnp.outer(jnp.arange(T, dtype=jnp.float32), inv_freq)
    cos = jnp.cos(freqs).astype(jnp.bfloat16).astype(jnp.float32)[None, :, None, :]
    sin = jnp.sin(freqs).astype(jnp.bfloat16).astype(jnp.float32)[None, :, None, :]

    eps = float(jnp.finfo(jnp.float32).eps)

    def rmsnorm(t_):
        return t_ * jax.lax.rsqrt(jnp.mean(t_ * t_, axis=-1, keepdims=True) + eps)

    def rope(t_):
        d2 = t_.shape[-1] // 2
        x1, x2 = t_[..., :d2], t_[..., d2:]
        return jnp.concatenate([x1 * cos + x2 * sin, -x1 * sin + x2 * cos], axis=-1)

    q, k = rope(rmsnorm(q)), rope(rmsnorm(k))
    qb, kb, vb = (q.astype(jnp.bfloat16), k.astype(jnp.bfloat16), v.astype(jnp.bfloat16))
    s = jnp.einsum("bqhd,bkhd->bhqk", qb, kb,
                   preferred_element_type=jnp.float32) / math.sqrt(d_head)
    mask = jnp.tril(jnp.ones((T, T), dtype=bool))
    s = jnp.where(mask[None, None], s, -jnp.inf)
    p = jax.nn.softmax(s, axis=-1).astype(jnp.bfloat16)
    o = jnp.einsum("bhqk,bkhd->bqhd", p, vb,
                   preferred_element_type=jnp.float32).astype(jnp.bfloat16)
    return o.reshape(B, T, d_model * expand_factor)


if __name__ == "__main__":
    # Config: d_model=32, n_heads=4, n_kv_heads=4, expand_factor=2 -> d_head=16
    B, T, d_model = 2, 16, 32
    n_heads, n_kv_heads, expand_factor = 4, 4, 2
    d_head = d_model // n_heads * expand_factor

    key = jax.random.PRNGKey(0)
    kx, kq, kk, kv = jax.random.split(key, 4)
    x = jax.random.normal(kx, (B, T, d_model), dtype=jnp.float32)

    bound = 1.0 / math.sqrt(d_model)
    wq = jax.random.uniform(kq, (n_heads * d_head, d_model), jnp.float32, -bound, bound)
    wk = jax.random.uniform(kk, (n_kv_heads * d_head, d_model), jnp.float32, -bound, bound)
    wv = jax.random.uniform(kv, (n_kv_heads * d_head, d_model), jnp.float32, -bound, bound)

    # One-time weight prep (outside the per-call hot path).
    wt_fused = prepare_qkv_weight(wq, wk, wv)

    y = mixer_attention_forward(x, wt_fused, n_heads=n_heads,
                                n_kv_heads=n_kv_heads, expand_factor=expand_factor)
    y = jax.block_until_ready(y)

    y_ref = reference_forward(x, wq, wk, wv, n_heads=n_heads,
                              n_kv_heads=n_kv_heads, expand_factor=expand_factor)

    assert y.shape == (B, T, d_model * expand_factor) and y.dtype == jnp.bfloat16
    # bf16 projection/attention pipeline vs (mostly) f32 reference -> bf16-level tolerance.
    diff = jnp.abs(y.astype(jnp.float32) - y_ref.astype(jnp.float32))
    assert float(jnp.max(diff)) < 1e-1, float(jnp.max(diff))
    assert float(jnp.mean(diff)) < 2.5e-2, float(jnp.mean(diff))
    print("KERNEL_OK")
</pallas_src>

<mosaic_0001>
module attributes {stable_mosaic.version = 11 : i64} {
  func.func @_qkv_proj_kernel(%arg0: i32, %arg1: i32, %arg2: i32, %arg3: memref<32x32xbf16, #tpu.memory_space<vmem>>, %arg4: memref<32x192xbf16, #tpu.memory_space<vmem>>, %arg5: memref<32x192xbf16, #tpu.memory_space<vmem>>, %arg6: memref<32x192xf32, #tpu.memory_space<vmem>>) attributes {dimension_semantics = [#tpu.dimension_semantics<parallel>, #tpu.dimension_semantics<parallel>, #tpu.dimension_semantics<arbitrary>], iteration_bounds = array<i64: 1, 1, 1>, scalar_prefetch = 0 : i64, scratch_operands = 1 : i64, tpu.core_type = #tpu.core_type<tc>, window_params = [{transform_indices = @transform_0, window_bounds = array<i64: 32, 32>}, {transform_indices = @transform_1, window_bounds = array<i64: 32, 192>}, {transform_indices = @transform_2, window_bounds = array<i64: 32, 192>}]} {
    %c0_i32 = arith.constant 0 : i32
    %0 = arith.cmpi eq, %arg2, %c0_i32 : i32
    %1 = arith.extui %0 : i1 to i32
    %c0_i32_0 = arith.constant 0 : i32
    %2 = arith.cmpi ne, %1, %c0_i32_0 : i32
    scf.if %2 {
      %cst_10 = arith.constant 0.000000e+00 : f32
      %12 = vector.broadcast %cst_10 : f32 to vector<32x192xf32>
      %c0_11 = arith.constant 0 : index
      %c0_12 = arith.constant 0 : index
      %13 = vector.load %arg6[%c0_11, %c0_12] : memref<32x192xf32, #tpu.memory_space<vmem>>, vector<32x192xf32>
      tpu.vector_store %arg6[%c0_11, %c0_12], %12 {strides = array<i32>} : memref<32x192xf32, #tpu.memory_space<vmem>>, vector<32x192xf32>,
    } else {
    }
    %c0 = arith.constant 0 : index
    %c0_1 = arith.constant 0 : index
    %3 = vector.load %arg6[%c0, %c0_1] : memref<32x192xf32, #tpu.memory_space<vmem>>, vector<32x192xf32>
    %c0_2 = arith.constant 0 : index
    %c0_3 = arith.constant 0 : index
    %4 = vector.load %arg3[%c0_2, %c0_3] : memref<32x32xbf16, #tpu.memory_space<vmem>>, vector<32x32xbf16>
    %c0_4 = arith.constant 0 : index
    %c0_5 = arith.constant 0 : index
    %5 = vector.load %arg4[%c0_4, %c0_5] : memref<32x192xbf16, #tpu.memory_space<vmem>>, vector<32x192xbf16>
    %cst = arith.constant dense<0.000000e+00> : vector<32x192xf32>
    %6 = tpu.matmul %4, %5, %cst {dimension_numbers = #tpu.dot_dimension_numbers<[1], [0], [0], [1], [0, 0, 1, 1], [], []>} : vector<32x32xbf16>, vector<32x192xbf16>, vector<32x192xf32> -> vector<32x192xf32>
    %7 = arith.addf %3, %6 : vector<32x192xf32>
    %c0_6 = arith.constant 0 : index
    %c0_7 = arith.constant 0 : index
    %8 = vector.load %arg6[%c0_6, %c0_7] : memref<32x192xf32, #tpu.memory_space<vmem>>, vector<32x192xf32>
    tpu.vector_store %arg6[%c0_6, %c0_7], %7 {strides = array<i32>} : memref<32x192xf32, #tpu.memory_space<vmem>>, vector<32x192xf32>,
    %c0_i32_8 = arith.constant 0 : i32
    %9 = arith.cmpi eq, %arg2, %c0_i32_8 : i32
    %10 = arith.extui %9 : i1 to i32
    %c0_i32_9 = arith.constant 0 : i32
    %11 = arith.cmpi ne, %10, %c0_i32_9 : i32
    scf.if %11 {
      %c0_10 = arith.constant 0 : index
      %c0_11 = arith.constant 0 : index
      %12 = vector.load %arg6[%c0_10, %c0_11] : memref<32x192xf32, #tpu.memory_space<vmem>>, vector<32x192xf32>
      %13 = arith.truncf %12 : vector<32x192xf32> to vector<32x192xbf16>
      %c0_12 = arith.constant 0 : index
      %c0_13 = arith.constant 0 : index
      %14 = vector.load %arg5[%c0_12, %c0_13] : memref<32x192xbf16, #tpu.memory_space<vmem>>, vector<32x192xbf16>
      tpu.vector_store %arg5[%c0_12, %c0_13], %13 {strides = array<i32>} : memref<32x192xbf16, #tpu.memory_space<vmem>>, vector<32x192xbf16>,
    } else {
    }
    return
  }
  func.func @transform_0(%arg0: i32, %arg1: i32, %arg2: i32) -> (i32, i32) {
    %c0_i32 = arith.constant 0 : i32
    return %arg0, %arg2 : i32, i32
  }
  func.func @transform_1(%arg0: i32, %arg1: i32, %arg2: i32) -> (i32, i32) {
    %c0_i32 = arith.constant 0 : i32
    return %arg2, %arg1 : i32, i32
  }
  func.func @transform_2(%arg0: i32, %arg1: i32, %arg2: i32) -> (i32, i32) {
    %c0_i32 = arith.constant 0 : i32
    return %arg0, %arg1 : i32, i32
  }
}

module attributes {stable_mosaic.version = 11 : i64} {
  func.func @_attn_kernel(%arg0: i32, %arg1: i32, %arg2: i32, %arg3: memref<1x16x192xbf16, #tpu.memory_space<vmem>>, %arg4: memref<1x16x192xbf16, #tpu.memory_space<vmem>>, %arg5: memref<16x16xbf16, #tpu.memory_space<vmem>>, %arg6: memref<16x16xbf16, #tpu.memory_space<vmem>>, %arg7: memref<16x16xbf16, #tpu.memory_space<vmem>>, %arg8: memref<16x16xbf16, #tpu.memory_space<vmem>>, %arg9: memref<1x16x64xbf16, #tpu.memory_space<vmem>>, %arg10: memref<16x64xbf16, #tpu.memory_space<vmem>>, %arg11: memref<16x64xf32, #tpu.memory_space<vmem>>, %arg12: memref<4x16x1xf32, #tpu.memory_space<vmem>>, %arg13: memref<4x16x1xf32, #tpu.memory_space<vmem>>) attributes {dimension_semantics = [#tpu.dimension_semantics<parallel>, #tpu.dimension_semantics<parallel>, #tpu.dimension_semantics<arbitrary>], iteration_bounds = array<i64: 2, 1, 1>, scalar_prefetch = 0 : i64, scratch_operands = 4 : i64, tpu.core_type = #tpu.core_type<tc>, window_params = [{transform_indices = @transform_0, window_bounds = array<i64: 1, 16, 192>}, {transform_indices = @transform_1, window_bounds = array<i64: 1, 16, 192>}, {transform_indices = @transform_2, window_bounds = array<i64: 16, 16>}, {transform_indices = @transform_3, window_bounds = array<i64: 16, 16>}, {transform_indices = @transform_4, window_bounds = array<i64: 16, 16>}, {transform_indices = @transform_5, window_bounds = array<i64: 16, 16>}, {transform_indices = @transform_6, window_bounds = array<i64: 1, 16, 64>}]} {
    %c0_i32 = arith.constant 0 : i32
    %0 = arith.cmpi eq, %arg2, %c0_i32 : i32
    %1 = arith.extui %0 : i1 to i32
    %c0_i32_0 = arith.constant 0 : i32
    %2 = arith.cmpi ne, %1, %c0_i32_0 : i32
    scf.if %2 {
      %c0 = arith.constant 0 : index
      %c0_3 = arith.constant 0 : index
      %9 = vector.load %arg5[%c0, %c0_3] : memref<16x16xbf16, #tpu.memory_space<vmem>>, vector<16x16xbf16>
      %10 = arith.extf %9 : vector<16x16xbf16> to vector<16x16xf32>
      %c0_4 = arith.constant 0 : index
      %c0_5 = arith.constant 0 : index
      %11 = vector.load %arg6[%c0_4, %c0_5] : memref<16x16xbf16, #tpu.memory_space<vmem>>, vector<16x16xbf16>
      %12 = arith.extf %11 : vector<16x16xbf16> to vector<16x16xf32>
      %c0_6 = arith.constant 0 : index
      %c0_7 = arith.constant 0 : index
      %c0_8 = arith.constant 0 : index
      %13 = vector.load %arg3[%c0_6, %c0_7, %c0_8] : memref<1x16x192xbf16, #tpu.memory_space<vmem>>, vector<1x16x16xbf16>
      %14 = vector.shape_cast %13 : vector<1x16x16xbf16> to vector<16x16xbf16>
      %15 = arith.extf %14 : vector<16x16xbf16> to vector<16x16xf32>
      %16 = arith.mulf %15, %15 : vector<16x16xf32>
      %cst = arith.constant dense<0.000000e+00> : vector<16xf32>
      %17 = vector.multi_reduction <add>, %16, %cst [1] : vector<16x16xf32> to vector<16xf32>
      %18 = vector.shape_cast %17 : vector<16xf32> to vector<16x1xf32>
      %cst_9 = arith.constant 1.600000e+01 : f32
      %19 = vector.broadcast %cst_9 : f32 to vector<16x1xf32>
      %20 = arith.divf %18, %19 : vector<16x1xf32>
      %cst_10 = arith.constant 1.1920929E-7 : f32
      %21 = vector.broadcast %cst_10 : f32 to vector<16x1xf32>
      %22 = arith.addf %20, %21 : vector<16x1xf32>
      %23 = math.rsqrt %22 : vector<16x1xf32>
      %24 = vector.broadcast %23 : vector<16x1xf32> to vector<16x16xf32>
      %25 = arith.mulf %15, %24 : vector<16x16xf32>
      %26 = vector.extract_strided_slice %25 {offsets = [0, 8], sizes = [16, 8], strides = [1, 1]} : vector<16x16xf32> to vector<16x8xf32>
      %27 = vector.extract_strided_slice %25 {offsets = [0, 0], sizes = [16, 8], strides = [1, 1]} : vector<16x16xf32> to vector<16x8xf32>
      %28 = tpu.concatenate %26, %27 in 1 : vector<16x8xf32>, vector<16x8xf32> -> vector<16x16xf32>
      %29 = arith.mulf %25, %10 : vector<16x16xf32>
      %30 = arith.mulf %28, %12 : vector<16x16xf32>
      %31 = arith.addf %29, %30 : vector<16x16xf32>
      %cst_11 = arith.constant 2.500000e-01 : f32
      %32 = vector.broadcast %cst_11 : f32 to vector<16x16xf32>
      %33 = arith.mulf %31, %32 : vector<16x16xf32>
      %34 = arith.truncf %33 : vector<16x16xf32> to vector<16x16xbf16>
      %c0_12 = arith.constant 0 : index
      %c0_13 = arith.constant 0 : index
      %35 = vector.load %arg10[%c0_12, %c0_13] : memref<16x64xbf16, #tpu.memory_space<vmem>>, vector<16x16xbf16>
      tpu.vector_store %arg10[%c0_12, %c0_13], %34 {strides = array<i32>} : memref<16x64xbf16, #tpu.memory_space<vmem>>, vector<16x16xbf16>,
      %c0_14 = arith.constant 0 : index
      %c0_15 = arith.constant 0 : index
      %c16 = arith.constant 16 : index
      %36 = vector.load %arg3[%c0_14, %c0_15, %c16] : memref<1x16x192xbf16, #tpu.memory_space<vmem>>, vector<1x16x16xbf16>
      %37 = vector.shape_cast %36 : vector<1x16x16xbf16> to vector<16x16xbf16>
      %38 = arith.extf %37 : vector<16x16xbf16> to vector<16x16xf32>
      %39 = arith.mulf %38, %38 : vector<16x16xf32>
      %cst_16 = arith.constant dense<0.000000e+00> : vector<16xf32>
      %40 = vector.multi_reduction <add>, %39, %cst_16 [1] : vector<16x16xf32> to vector<16xf32>
      %41 = vector.shape_cast %40 : vector<16xf32> to vector<16x1xf32>
      %cst_17 = arith.constant 1.600000e+01 : f32
      %42 = vector.broadcast %cst_17 : f32 to vector<16x1xf32>
      %43 = arith.divf %41, %42 : vector<16x1xf32>
      %cst_18 = arith.constant 1.1920929E-7 : f32
      %44 = vector.broadcast %cst_18 : f32 to vector<16x1xf32>
      %45 = arith.addf %43, %44 : vector<16x1xf32>
      %46 = math.rsqrt %45 : vector<16x1xf32>
      %47 = vector.broadcast %46 : vector<16x1xf32> to vector<16x16xf32>
      %48 = arith.mulf %38, %47 : vector<16x16xf32>
      %49 = vector.extract_strided_slice %48 {offsets = [0, 8], sizes = [16, 8], strides = [1, 1]} : vector<16x16xf32> to vector<16x8xf32>
      %50 = vector.extract_strided_slice %48 {offsets = [0, 0], sizes = [16, 8], strides = [1, 1]} : vector<16x16xf32> to vector<16x8xf32>
      %51 = tpu.concatenate %49, %50 in 1 : vector<16x8xf32>, vector<16x8xf32> -> vector<16x16xf32>
      %52 = arith.mulf %48, %10 : vector<16x16xf32>
      %53 = arith.mulf %51, %12 : vector<16x16xf32>
      %54 = arith.addf %52, %53 : vector<16x16xf32>
      %cst_19 = arith.constant 2.500000e-01 : f32
      %55 = vector.broadcast %cst_19 : f32 to vector<16x16xf32>
      %56 = arith.mulf %54, %55 : vector<16x16xf32>
      %57 = arith.truncf %56 : vector<16x16xf32> to vector<16x16xbf16>
      %c0_20 = arith.constant 0 : index
      %c16_21 = arith.constant 16 : index
      %58 = vector.load %arg10[%c0_20, %c16_21] : memref<16x64xbf16, #tpu.memory_space<vmem>>, vector<16x16xbf16>
      tpu.vector_store %arg10[%c0_20, %c16_21], %57 {strides = array<i32>} : memref<16x64xbf16, #tpu.memory_space<vmem>>, vector<16x16xbf16>,
      %c0_22 = arith.constant 0 : index
      %c0_23 = arith.constant 0 : index
      %c32 = arith.constant 32 : index
      %59 = vector.load %arg3[%c0_22, %c0_23, %c32] : memref<1x16x192xbf16, #tpu.memory_space<vmem>>, vector<1x16x16xbf16>
      %60 = vector.shape_cast %59 : vector<1x16x16xbf16> to vector<16x16xbf16>
      %61 = arith.extf %60 : vector<16x16xbf16> to vector<16x16xf32>
      %62 = arith.mulf %61, %61 : vector<16x16xf32>
      %cst_24 = arith.constant dense<0.000000e+00> : vector<16xf32>
      %63 = vector.multi_reduction <add>, %62, %cst_24 [1] : vector<16x16xf32> to vector<16xf32>
      %64 = vector.shape_cast %63 : vector<16xf32> to vector<16x1xf32>
      %cst_25 = arith.constant 1.600000e+01 : f32
      %65 = vector.broadcast %cst_25 : f32 to vector<16x1xf32>
      %66 = arith.divf %64, %65 : vector<16x1xf32>
      %cst_26 = arith.constant 1.1920929E-7 : f32
      %67 = vector.broadcast %cst_26 : f32 to vector<16x1xf32>
      %68 = arith.addf %66, %67 : vector<16x1xf32>
      %69 = math.rsqrt %68 : vector<16x1xf32>
      %70 = vector.broadcast %69 : vector<16x1xf32> to vector<16x16xf32>
      %71 = arith.mulf %61, %70 : vector<16x16xf32>
      %72 = vector.extract_strided_slice %71 {offsets = [0, 8], sizes = [16, 8], strides = [1, 1]} : vector<16x16xf32> to vector<16x8xf32>
      %73 = vector.extract_strided_slice %71 {offsets = [0, 0], sizes = [16, 8], strides = [1, 1]} : vector<16x16xf32> to vector<16x8xf32>
      %74 = tpu.concatenate %72, %73 in 1 : vector<16x8xf32>, vector<16x8xf32> -> vector<16x16xf32>
      %75 = arith.mulf %71, %10 : vector<16x16xf32>
      %76 = arith.mulf %74, %12 : vector<16x16xf32>
      %77 = arith.addf %75, %76 : vector<16x16xf32>
      %cst_27 = arith.constant 2.500000e-01 : f32
      %78 = vector.broadcast %cst_27 : f32 to vector<16x16xf32>
      %79 = arith.mulf %77, %78 : vector<16x16xf32>
      %80 = arith.truncf %79 : vector<16x16xf32> to vector<16x16xbf16>
      %c0_28 = arith.constant 0 : index
      %c32_29 = arith.constant 32 : index
      %81 = vector.load %arg10[%c0_28, %c32_29] : memref<16x64xbf16, #tpu.memory_space<vmem>>, vector<16x16xbf16>
      tpu.vector_store %arg10[%c0_28, %c32_29], %80 {strides = array<i32>} : memref<16x64xbf16, #tpu.memory_space<vmem>>, vector<16x16xbf16>,
      %c0_30 = arith.constant 0 : index
      %c0_31 = arith.constant 0 : index
      %c48 = arith.constant 48 : index
      %82 = vector.load %arg3[%c0_30, %c0_31, %c48] : memref<1x16x192xbf16, #tpu.memory_space<vmem>>, vector<1x16x16xbf16>
      %83 = vector.shape_cast %82 : vector<1x16x16xbf16> to vector<16x16xbf16>
      %84 = arith.extf %83 : vector<16x16xbf16> to vector<16x16xf32>
      %85 = arith.mulf %84, %84 : vector<16x16xf32>
      %cst_32 = arith.constant dense<0.000000e+00> : vector<16xf32>
      %86 = vector.multi_reduction <add>, %85, %cst_32 [1] : vector<16x16xf32> to vector<16xf32>
      %87 = vector.shape_cast %86 : vector<16xf32> to vector<16x1xf32>
      %cst_33 = arith.constant 1.600000e+01 : f32
      %88 = vector.broadcast %cst_33 : f32 to vector<16x1xf32>
      %89 = arith.divf %87, %88 : vector<16x1xf32>
      %cst_34 = arith.constant 1.1920929E-7 : f32
      %90 = vector.broadcast %cst_34 : f32 to vector<16x1xf32>
      %91 = arith.addf %89, %90 : vector<16x1xf32>
      %92 = math.rsqrt %91 : vector<16x1xf32>
      %93 = vector.broadcast %92 : vector<16x1xf32> to vector<16x16xf32>
      %94 = arith.mulf %84, %93 : vector<16x16xf32>
      %95 = vector.extract_strided_slice %94 {offsets = [0, 8], sizes = [16, 8], strides = [1, 1]} : vector<16x16xf32> to vector<16x8xf32>
      %96 = vector.extract_strided_slice %94 {offsets = [0, 0], sizes = [16, 8], strides = [1, 1]} : vector<16x16xf32> to vector<16x8xf32>
      %97 = tpu.concatenate %95, %96 in 1 : vector<16x8xf32>, vector<16x8xf32> -> vector<16x16xf32>
      %98 = arith.mulf %94, %10 : vector<16x16xf32>
      %99 = arith.mulf %97, %12 : vector<16x16xf32>
      %100 = arith.addf %98, %99 : vector<16x16xf32>
      %cst_35 = arith.constant 2.500000e-01 : f32
      %101 = vector.broadcast %cst_35 : f32 to vector<16x16xf32>
      %102 = arith.mulf %100, %101 : vector<16x16xf32>
      %103 = arith.truncf %102 : vector<16x16xf32> to vector<16x16xbf16>
      %c0_36 = arith.constant 0 : index
      %c48_37 = arith.constant 48 : index
      %104 = vector.load %arg10[%c0_36, %c48_37] : memref<16x64xbf16, #tpu.memory_space<vmem>>, vector<16x16xbf16>
      tpu.vector_store %arg10[%c0_36, %c48_37], %103 {strides = array<i32>} : memref<16x64xbf16, #tpu.memory_space<vmem>>, vector<16x16xbf16>,
      %cst_38 = arith.constant 0.000000e+00 : f32
      %105 = vector.broadcast %cst_38 : f32 to vector<16x64xf32>
      %c0_39 = arith.constant 0 : index
      %c0_40 = arith.constant 0 : index
      %106 = vector.load %arg11[%c0_39, %c0_40] : memref<16x64xf32, #tpu.memory_space<vmem>>, vector<16x64xf32>
      tpu.vector_store %arg11[%c0_39, %c0_40], %105 {strides = array<i32>} : memref<16x64xf32, #tpu.memory_space<vmem>>, vector<16x64xf32>,
      %cst_41 = arith.constant 0xFF800000 : f32
      %107 = vector.broadcast %cst_41 : f32 to vector<4x16x1xf32>
      %c0_42 = arith.constant 0 : index
      %c0_43 = arith.constant 0 : index
      %c0_44 = arith.constant 0 : index
      %108 = vector.load %arg12[%c0_42, %c0_43, %c0_44] : memref<4x16x1xf32, #tpu.memory_space<vmem>>, vector<4x16x1xf32>
      tpu.vector_store %arg12[%c0_42, %c0_43, %c0_44], %107 {strides = array<i32>} : memref<4x16x1xf32, #tpu.memory_space<vmem>>, vector<4x16x1xf32>,
      %cst_45 = arith.constant 0.000000e+00 : f32
      %109 = vector.broadcast %cst_45 : f32 to vector<4x16x1xf32>
      %c0_46 = arith.constant 0 : index
      %c0_47 = arith.constant 0 : index
      %c0_48 = arith.constant 0 : index
      %110 = vector.load %arg13[%c0_46, %c0_47, %c0_48] : memref<4x16x1xf32, #tpu.memory_space<vmem>>, vector<4x16x1xf32>
      tpu.vector_store %arg13[%c0_46, %c0_47, %c0_48], %109 {strides = array<i32>} : memref<4x16x1xf32, #tpu.memory_space<vmem>>, vector<4x16x1xf32>,
    } else {
    }
    %3 = arith.cmpi sle, %arg2, %arg1 : i32
    %4 = arith.extui %3 : i1 to i32
    %c0_i32_1 = arith.constant 0 : i32
    %5 = arith.cmpi ne, %4, %c0_i32_1 : i32
    scf.if %5 {
      %c0 = arith.constant 0 : index
      %c0_3 = arith.constant 0 : index
      %9 = vector.load %arg7[%c0, %c0_3] : memref<16x16xbf16, #tpu.memory_space<vmem>>, vector<16x16xbf16>
      %10 = arith.extf %9 : vector<16x16xbf16> to vector<16x16xf32>
      %c0_4 = arith.constant 0 : index
      %c0_5 = arith.constant 0 : index
      %11 = vector.load %arg8[%c0_4, %c0_5] : memref<16x16xbf16, #tpu.memory_space<vmem>>, vector<16x16xbf16>
      %12 = arith.extf %11 : vector<16x16xbf16> to vector<16x16xf32>
      %13 = tpu.iota {dimensions = array<i32: 0>} : vector<16x16xi32>
      %14 = tpu.iota {dimensions = array<i32: 1>} : vector<16x16xi32>
      %15 = arith.subi %arg1, %arg2 : i32
      %c16_i32 = arith.constant 16 : i32
      %16 = arith.muli %15, %c16_i32 : i32
      %17 = vector.broadcast %16 : i32 to vector<16x16xi32>
      %18 = arith.addi %13, %17 : vector<16x16xi32>
      %19 = arith.cmpi sle, %14, %18 : vector<16x16xi32>
      %c0_6 = arith.constant 0 : index
      %c0_7 = arith.constant 0 : index
      %c64 = arith.constant 64 : index
      %20 = vector.load %arg4[%c0_6, %c0_7, %c64] : memref<1x16x192xbf16, #tpu.memory_space<vmem>>, vector<1x16x16xbf16>
      %21 = vector.shape_cast %20 : vector<1x16x16xbf16> to vector<16x16xbf16>
      %22 = arith.extf %21 : vector<16x16xbf16> to vector<16x16xf32>
      %c0_8 = arith.constant 0 : index
      %c0_9 = arith.constant 0 : index
      %c128 = arith.constant 128 : index
      %23 = vector.load %arg4[%c0_8, %c0_9, %c128] : memref<1x16x192xbf16, #tpu.memory_space<vmem>>, vector<1x16x16xbf16>
      %24 = vector.shape_cast %23 : vector<1x16x16xbf16> to vector<16x16xbf16>
      %25 = arith.mulf %22, %22 : vector<16x16xf32>
      %cst = arith.constant dense<0.000000e+00> : vector<16xf32>
      %26 = vector.multi_reduction <add>, %25, %cst [1] : vector<16x16xf32> to vector<16xf32>
      %27 = vector.shape_cast %26 : vector<16xf32> to vector<16x1xf32>
      %cst_10 = arith.constant 1.600000e+01 : f32
      %28 = vector.broadcast %cst_10 : f32 to vector<16x1xf32>
      %29 = arith.divf %27, %28 : vector<16x1xf32>
      %cst_11 = arith.constant 1.1920929E-7 : f32
      %30 = vector.broadcast %cst_11 : f32 to vector<16x1xf32>
      %31 = arith.addf %29, %30 : vector<16x1xf32>
      %32 = math.rsqrt %31 : vector<16x1xf32>
      %33 = vector.broadcast %32 : vector<16x1xf32> to vector<16x16xf32>
      %34 = arith.mulf %22, %33 : vector<16x16xf32>
      %35 = vector.extract_strided_slice %34 {offsets = [0, 8], sizes = [16, 8], strides = [1, 1]} : vector<16x16xf32> to vector<16x8xf32>
      %36 = vector.extract_strided_slice %34 {offsets = [0, 0], sizes = [16, 8], strides = [1, 1]} : vector<16x16xf32> to vector<16x8xf32>
      %37 = tpu.concatenate %35, %36 in 1 : vector<16x8xf32>, vector<16x8xf32> -> vector<16x16xf32>
      %38 = arith.mulf %34, %10 : vector<16x16xf32>
      %39 = arith.mulf %37, %12 : vector<16x16xf32>
      %40 = arith.addf %38, %39 : vector<16x16xf32>
      %41 = arith.truncf %40 : vector<16x16xf32> to vector<16x16xbf16>
      %c0_12 = arith.constant 0 : index
      %c0_13 = arith.constant 0 : index
      %42 = vector.load %arg10[%c0_12, %c0_13] : memref<16x64xbf16, #tpu.memory_space<vmem>>, vector<16x16xbf16>
      %cst_14 = arith.constant dense<0.000000e+00> : vector<16x16xf32>
      %43 = tpu.matmul %42, %41, %cst_14 {dimension_numbers = #tpu.dot_dimension_numbers<[1], [1], [0], [0], [0, 0, 1, 0], [], []>} : vector<16x16xbf16>, vector<16x16xbf16>, vector<16x16xf32> -> vector<16x16xf32>
      %cst_15 = arith.constant 0xFF800000 : f32
      %44 = vector.broadcast %cst_15 : f32 to vector<16x16xf32>
      %45 = arith.select %19, %43, %44 : vector<16x16xi1>, vector<16x16xf32>
      %c0_16 = arith.constant 0 : index
      %c0_17 = arith.constant 0 : index
      %c0_18 = arith.constant 0 : index
      %46 = vector.load %arg12[%c0_16, %c0_17, %c0_18] : memref<4x16x1xf32, #tpu.memory_space<vmem>>, vector<1x16x1xf32>
      %47 = vector.shape_cast %46 : vector<1x16x1xf32> to vector<16x1xf32>
      %cst_19 = arith.constant dense<0xFF800000> : vector<16xf32>
      %48 = vector.multi_reduction <maximumf>, %45, %cst_19 [1] : vector<16x16xf32> to vector<16xf32>
      %49 = vector.shape_cast %48 : vector<16xf32> to vector<16x1xf32>
      %50 = arith.maximumf %47, %49 : vector<16x1xf32>
      %51 = arith.subf %47, %50 : vector<16x1xf32>
      %52 = math.exp %51 : vector<16x1xf32>
      %53 = vector.broadcast %50 : vector<16x1xf32> to vector<16x16xf32>
      %54 = arith.subf %45, %53 : vector<16x16xf32>
      %55 = math.exp %54 : vector<16x16xf32>
      %56 = arith.truncf %55 : vector<16x16xf32> to vector<16x16xbf16>
      %c0_20 = arith.constant 0 : index
      %c0_21 = arith.constant 0 : index
      %c0_22 = arith.constant 0 : index
      %57 = vector.load %arg13[%c0_20, %c0_21, %c0_22] : memref<4x16x1xf32, #tpu.memory_space<vmem>>, vector<1x16x1xf32>
      %58 = vector.shape_cast %57 : vector<1x16x1xf32> to vector<16x1xf32>
      %59 = arith.mulf %52, %58 : vector<16x1xf32>
      %cst_23 = arith.constant dense<0.000000e+00> : vector<16xf32>
      %60 = vector.multi_reduction <add>, %55, %cst_23 [1] : vector<16x16xf32> to vector<16xf32>
      %61 = vector.shape_cast %60 : vector<16xf32> to vector<16x1xf32>
      %62 = arith.addf %59, %61 : vector<16x1xf32>
      %c0_24 = arith.constant 0 : index
      %c0_25 = arith.constant 0 : index
      %c0_26 = arith.constant 0 : index
      %63 = vector.load %arg13[%c0_24, %c0_25, %c0_26] : memref<4x16x1xf32, #tpu.memory_space<vmem>>, vector<1x16x1xf32>
      %64 = vector.shape_cast %63 : vector<1x16x1xf32> to vector<16x1xf32>
      %65 = vector.shape_cast %62 : vector<16x1xf32> to vector<1x16x1xf32>
      tpu.vector_store %arg13[%c0_24, %c0_25, %c0_26], %65 {strides = array<i32>} : memref<4x16x1xf32, #tpu.memory_space<vmem>>, vector<1x16x1xf32>,
      %c0_27 = arith.constant 0 : index
      %c0_28 = arith.constant 0 : index
      %c0_29 = arith.constant 0 : index
      %66 = vector.load %arg12[%c0_27, %c0_28, %c0_29] : memref<4x16x1xf32, #tpu.memory_space<vmem>>, vector<1x16x1xf32>
      %67 = vector.shape_cast %66 : vector<1x16x1xf32> to vector<16x1xf32>
      %68 = vector.shape_cast %50 : vector<16x1xf32> to vector<1x16x1xf32>
      tpu.vector_store %arg12[%c0_27, %c0_28, %c0_29], %68 {strides = array<i32>} : memref<4x16x1xf32, #tpu.memory_space<vmem>>, vector<1x16x1xf32>,
      %cst_30 = arith.constant dense<0.000000e+00> : vector<16x16xf32>
      %69 = tpu.matmul %56, %24, %cst_30 {dimension_numbers = #tpu.dot_dimension_numbers<[1], [0], [0], [1], [0, 0, 1, 1], [], []>} : vector<16x16xbf16>, vector<16x16xbf16>, vector<16x16xf32> -> vector<16x16xf32>
      %c0_31 = arith.constant 0 : index
      %c0_32 = arith.constant 0 : index
      %70 = vector.load %arg11[%c0_31, %c0_32] : memref<16x64xf32, #tpu.memory_space<vmem>>, vector<16x16xf32>
      %71 = vector.broadcast %52 : vector<16x1xf32> to vector<16x16xf32>
      %72 = arith.mulf %71, %70 : vector<16x16xf32>
      %73 = arith.addf %72, %69 : vector<16x16xf32>
      %c0_33 = arith.constant 0 : index
      %c0_34 = arith.constant 0 : index
      %74 = vector.load %arg11[%c0_33, %c0_34] : memref<16x64xf32, #tpu.memory_space<vmem>>, vector<16x16xf32>
      tpu.vector_store %arg11[%c0_33, %c0_34], %73 {strides = array<i32>} : memref<16x64xf32, #tpu.memory_space<vmem>>, vector<16x16xf32>,
      %c0_35 = arith.constant 0 : index
      %c0_36 = arith.constant 0 : index
      %c80 = arith.constant 80 : index
      %75 = vector.load %arg4[%c0_35, %c0_36, %c80] : memref<1x16x192xbf16, #tpu.memory_space<vmem>>, vector<1x16x16xbf16>
      %76 = vector.shape_cast %75 : vector<1x16x16xbf16> to vector<16x16xbf16>
      %77 = arith.extf %76 : vector<16x16xbf16> to vector<16x16xf32>
      %c0_37 = arith.constant 0 : index
      %c0_38 = arith.constant 0 : index
      %c144 = arith.constant 144 : index
      %78 = vector.load %arg4[%c0_37, %c0_38, %c144] : memref<1x16x192xbf16, #tpu.memory_space<vmem>>, vector<1x16x16xbf16>
      %79 = vector.shape_cast %78 : vector<1x16x16xbf16> to vector<16x16xbf16>
      %80 = arith.mulf %77, %77 : vector<16x16xf32>
      %cst_39 = arith.constant dense<0.000000e+00> : vector<16xf32>
      %81 = vector.multi_reduction <add>, %80, %cst_39 [1] : vector<16x16xf32> to vector<16xf32>
      %82 = vector.shape_cast %81 : vector<16xf32> to vector<16x1xf32>
      %cst_40 = arith.constant 1.600000e+01 : f32
      %83 = vector.broadcast %cst_40 : f32 to vector<16x1xf32>
      %84 = arith.divf %82, %83 : vector<16x1xf32>
      %cst_41 = arith.constant 1.1920929E-7 : f32
      %85 = vector.broadcast %cst_41 : f32 to vector<16x1xf32>
      %86 = arith.addf %84, %85 : vector<16x1xf32>
      %87 = math.rsqrt %86 : vector<16x1xf32>
      %88 = vector.broadcast %87 : vector<16x1xf32> to vector<16x16xf32>
      %89 = arith.mulf %77, %88 : vector<16x16xf32>
      %90 = vector.extract_strided_slice %89 {offsets = [0, 8], sizes = [16, 8], strides = [1, 1]} : vector<16x16xf32> to vector<16x8xf32>
      %91 = vector.extract_strided_slice %89 {offsets = [0, 0], sizes = [16, 8], strides = [1, 1]} : vector<16x16xf32> to vector<16x8xf32>
      %92 = tpu.concatenate %90, %91 in 1 : vector<16x8xf32>, vector<16x8xf32> -> vector<16x16xf32>
      %93 = arith.mulf %89, %10 : vector<16x16xf32>
      %94 = arith.mulf %92, %12 : vector<16x16xf32>
      %95 = arith.addf %93, %94 : vector<16x16xf32>
      %96 = arith.truncf %95 : vector<16x16xf32> to vector<16x16xbf16>
      %c0_42 = arith.constant 0 : index
      %c16 = arith.constant 16 : index
      %97 = vector.load %arg10[%c0_42, %c16] : memref<16x64xbf16, #tpu.memory_space<vmem>>, vector<16x16xbf16>
      %cst_43 = arith.constant dense<0.000000e+00> : vector<16x16xf32>
      %98 = tpu.matmul %97, %96, %cst_43 {dimension_numbers = #tpu.dot_dimension_numbers<[1], [1], [0], [0], [0, 0, 1, 0], [], []>} : vector<16x16xbf16>, vector<16x16xbf16>, vector<16x16xf32> -> vector<16x16xf32>
      %cst_44 = arith.constant 0xFF800000 : f32
      %99 = vector.broadcast %cst_44 : f32 to vector<16x16xf32>
      %100 = arith.select %19, %98, %99 : vector<16x16xi1>, vector<16x16xf32>
      %c1 = arith.constant 1 : index
      %c0_45 = arith.constant 0 : index
      %c0_46 = arith.constant 0 : index
      %101 = vector.load %arg12[%c1, %c0_45, %c0_46] : memref<4x16x1xf32, #tpu.memory_space<vmem>>, vector<1x16x1xf32>
      %102 = vector.shape_cast %101 : vector<1x16x1xf32> to vector<16x1xf32>
      %cst_47 = arith.constant dense<0xFF800000> : vector<16xf32>
      %103 = vector.multi_reduction <maximumf>, %100, %cst_47 [1] : vector<16x16xf32> to vector<16xf32>
      %104 = vector.shape_cast %103 : vector<16xf32> to vector<16x1xf32>
      %105 = arith.maximumf %102, %104 : vector<16x1xf32>
      %106 = arith.subf %102, %105 : vector<16x1xf32>
      %107 = math.exp %106 : vector<16x1xf32>
      %108 = vector.broadcast %105 : vector<16x1xf32> to vector<16x16xf32>
      %109 = arith.subf %100, %108 : vector<16x16xf32>
      %110 = math.exp %109 : vector<16x16xf32>
      %111 = arith.truncf %110 : vector<16x16xf32> to vector<16x16xbf16>
      %c1_48 = arith.constant 1 : index
      %c0_49 = arith.constant 0 : index
      %c0_50 = arith.constant 0 : index
      %112 = vector.load %arg13[%c1_48, %c0_49, %c0_50] : memref<4x16x1xf32, #tpu.memory_space<vmem>>, vector<1x16x1xf32>
      %113 = vector.shape_cast %112 : vector<1x16x1xf32> to vector<16x1xf32>
      %114 = arith.mulf %107, %113 : vector<16x1xf32>
      %cst_51 = arith.constant dense<0.000000e+00> : vector<16xf32>
      %115 = vector.multi_reduction <add>, %110, %cst_51 [1] : vector<16x16xf32> to vector<16xf32>
      %116 = vector.shape_cast %115 : vector<16xf32> to vector<16x1xf32>
      %117 = arith.addf %114, %116 : vector<16x1xf32>
      %c1_52 = arith.constant 1 : index
      %c0_53 = arith.constant 0 : index
      %c0_54 = arith.constant 0 : index
      %118 = vector.load %arg13[%c1_52, %c0_53, %c0_54] : memref<4x16x1xf32, #tpu.memory_space<vmem>>, vector<1x16x1xf32>
      %119 = vector.shape_cast %118 : vector<1x16x1xf32> to vector<16x1xf32>
      %120 = vector.shape_cast %117 : vector<16x1xf32> to vector<1x16x1xf32>
      tpu.vector_store %arg13[%c1_52, %c0_53, %c0_54], %120 {strides = array<i32>} : memref<4x16x1xf32, #tpu.memory_space<vmem>>, vector<1x16x1xf32>,
      %c1_55 = arith.constant 1 : index
      %c0_56 = arith.constant 0 : index
      %c0_57 = arith.constant 0 : index
      %121 = vector.load %arg12[%c1_55, %c0_56, %c0_57] : memref<4x16x1xf32, #tpu.memory_space<vmem>>, vector<1x16x1xf32>
      %122 = vector.shape_cast %121 : vector<1x16x1xf32> to vector<16x1xf32>
      %123 = vector.shape_cast %105 : vector<16x1xf32> to vector<1x16x1xf32>
      tpu.vector_store %arg12[%c1_55, %c0_56, %c0_57], %123 {strides = array<i32>} : memref<4x16x1xf32, #tpu.memory_space<vmem>>, vector<1x16x1xf32>,
      %cst_58 = arith.constant dense<0.000000e+00> : vector<16x16xf32>
      %124 = tpu.matmul %111, %79, %cst_58 {dimension_numbers = #tpu.dot_dimension_numbers<[1], [0], [0], [1], [0, 0, 1, 1], [], []>} : vector<16x16xbf16>, vector<16x16xbf16>, vector<16x16xf32> -> vector<16x16xf32>
      %c0_59 = arith.constant 0 : index
      %c16_60 = arith.constant 16 : index
      %125 = vector.load %arg11[%c0_59, %c16_60] : memref<16x64xf32, #tpu.memory_space<vmem>>, vector<16x16xf32>
      %126 = vector.broadcast %107 : vector<16x1xf32> to vector<16x16xf32>
      %127 = arith.mulf %126, %125 : vector<16x16xf32>
      %128 = arith.addf %127, %124 : vector<16x16xf32>
      %c0_61 = arith.constant 0 : index
      %c16_62 = arith.constant 16 : index
      %129 = vector.load %arg11[%c0_61, %c16_62] : memref<16x64xf32, #tpu.memory_space<vmem>>, vector<16x16xf32>
      tpu.vector_store %arg11[%c0_61, %c16_62], %128 {strides = array<i32>} : memref<16x64xf32, #tpu.memory_space<vmem>>, vector<16x16xf32>,
      %c0_63 = arith.constant 0 : index
      %c0_64 = arith.constant 0 : index
      %c96 = arith.constant 96 : index
      %130 = vector.load %arg4[%c0_63, %c0_64, %c96] : memref<1x16x192xbf16, #tpu.memory_space<vmem>>, vector<1x16x16xbf16>
      %131 = vector.shape_cast %130 : vector<1x16x16xbf16> to vector<16x16xbf16>
      %132 = arith.extf %131 : vector<16x16xbf16> to vector<16x16xf32>
      %c0_65 = arith.constant 0 : index
      %c0_66 = arith.constant 0 : index
      %c160 = arith.constant 160 : index
      %133 = vector.load %arg4[%c0_65, %c0_66, %c160] : memref<1x16x192xbf16, #tpu.memory_space<vmem>>, vector<1x16x16xbf16>
      %134 = vector.shape_cast %133 : vector<1x16x16xbf16> to vector<16x16xbf16>
      %135 = arith.mulf %132, %132 : vector<16x16xf32>
      %cst_67 = arith.constant dense<0.000000e+00> : vector<16xf32>
      %136 = vector.multi_reduction <add>, %135, %cst_67 [1] : vector<16x16xf32> to vector<16xf32>
      %137 = vector.shape_cast %136 : vector<16xf32> to vector<16x1xf32>
      %cst_68 = arith.constant 1.600000e+01 : f32
      %138 = vector.broadcast %cst_68 : f32 to vector<16x1xf32>
      %139 = arith.divf %137, %138 : vector<16x1xf32>
      %cst_69 = arith.constant 1.1920929E-7 : f32
      %140 = vector.broadcast %cst_69 : f32 to vector<16x1xf32>
      %141 = arith.addf %139, %140 : vector<16x1xf32>
      %142 = math.rsqrt %141 : vector<16x1xf32>
      %143 = vector.broadcast %142 : vector<16x1xf32> to vector<16x16xf32>
      %144 = arith.mulf %132, %143 : vector<16x16xf32>
      %145 = vector.extract_strided_slice %144 {offsets = [0, 8], sizes = [16, 8], strides = [1, 1]} : vector<16x16xf32> to vector<16x8xf32>
      %146 = vector.extract_strided_slice %144 {offsets = [0, 0], sizes = [16, 8], strides = [1, 1]} : vector<16x16xf32> to vector<16x8xf32>
      %147 = tpu.concatenate %145, %146 in 1 : vector<16x8xf32>, vector<16x8xf32> -> vector<16x16xf32>
      %148 = arith.mulf %144, %10 : vector<16x16xf32>
      %149 = arith.mulf %147, %12 : vector<16x16xf32>
      %150 = arith.addf %148, %149 : vector<16x16xf32>
      %151 = arith.truncf %150 : vector<16x16xf32> to vector<16x16xbf16>
      %c0_70 = arith.constant 0 : index
      %c32 = arith.constant 32 : index
      %152 = vector.load %arg10[%c0_70, %c32] : memref<16x64xbf16, #tpu.memory_space<vmem>>, vector<16x16xbf16>
      %cst_71 = arith.constant dense<0.000000e+00> : vector<16x16xf32>
      %153 = tpu.matmul %152, %151, %cst_71 {dimension_numbers = #tpu.dot_dimension_numbers<[1], [1], [0], [0], [0, 0, 1, 0], [], []>} : vector<16x16xbf16>, vector<16x16xbf16>, vector<16x16xf32> -> vector<16x16xf32>
      %cst_72 = arith.constant 0xFF800000 : f32
      %154 = vector.broadcast %cst_72 : f32 to vector<16x16xf32>
      %155 = arith.select %19, %153, %154 : vector<16x16xi1>, vector<16x16xf32>
      %c2 = arith.constant 2 : index
      %c0_73 = arith.constant 0 : index
      %c0_74 = arith.constant 0 : index
      %156 = vector.load %arg12[%c2, %c0_73, %c0_74] : memref<4x16x1xf32, #tpu.memory_space<vmem>>, vector<1x16x1xf32>
      %157 = vector.shape_cast %156 : vector<1x16x1xf32> to vector<16x1xf32>
      %cst_75 = arith.constant dense<0xFF800000> : vector<16xf32>
      %158 = vector.multi_reduction <maximumf>, %155, %cst_75 [1] : vector<16x16xf32> to vector<16xf32>
      %159 = vector.shape_cast %158 : vector<16xf32> to vector<16x1xf32>
      %160 = arith.maximumf %157, %159 : vector<16x1xf32>
      %161 = arith.subf %157, %160 : vector<16x1xf32>
      %162 = math.exp %161 : vector<16x1xf32>
      %163 = vector.broadcast %160 : vector<16x1xf32> to vector<16x16xf32>
      %164 = arith.subf %155, %163 : vector<16x16xf32>
      %165 = math.exp %164 : vector<16x16xf32>
      %166 = arith.truncf %165 : vector<16x16xf32> to vector<16x16xbf16>
      %c2_76 = arith.constant 2 : index
      %c0_77 = arith.constant 0 : index
      %c0_78 = arith.constant 0 : index
      %167 = vector.load %arg13[%c2_76, %c0_77, %c0_78] : memref<4x16x1xf32, #tpu.memory_space<vmem>>, vector<1x16x1xf32>
      %168 = vector.shape_cast %167 : vector<1x16x1xf32> to vector<16x1xf32>
      %169 = arith.mulf %162, %168 : vector<16x1xf32>
      %cst_79 = arith.constant dense<0.000000e+00> : vector<16xf32>
      %170 = vector.multi_reduction <add>, %165, %cst_79 [1] : vector<16x16xf32> to vector<16xf32>
      %171 = vector.shape_cast %170 : vector<16xf32> to vector<16x1xf32>
      %172 = arith.addf %169, %171 : vector<16x1xf32>
      %c2_80 = arith.constant 2 : index
      %c0_81 = arith.constant 0 : index
      %c0_82 = arith.constant 0 : index
      %173 = vector.load %arg13[%c2_80, %c0_81, %c0_82] : memref<4x16x1xf32, #tpu.memory_space<vmem>>, vector<1x16x1xf32>
      %174 = vector.shape_cast %173 : vector<1x16x1xf32> to vector<16x1xf32>
      %175 = vector.shape_cast %172 : vector<16x1xf32> to vector<1x16x1xf32>
      tpu.vector_store %arg13[%c2_80, %c0_81, %c0_82], %175 {strides = array<i32>} : memref<4x16x1xf32, #tpu.memory_space<vmem>>, vector<1x16x1xf32>,
      %c2_83 = arith.constant 2 : index
      %c0_84 = arith.constant 0 : index
      %c0_85 = arith.constant 0 : index
      %176 = vector.load %arg12[%c2_83, %c0_84, %c0_85] : memref<4x16x1xf32, #tpu.memory_space<vmem>>, vector<1x16x1xf32>
      %177 = vector.shape_cast %176 : vector<1x16x1xf32> to vector<16x1xf32>
      %178 = vector.shape_cast %160 : vector<16x1xf32> to vector<1x16x1xf32>
      tpu.vector_store %arg12[%c2_83, %c0_84, %c0_85], %178 {strides = array<i32>} : memref<4x16x1xf32, #tpu.memory_space<vmem>>, vector<1x16x1xf32>,
      %cst_86 = arith.constant dense<0.000000e+00> : vector<16x16xf32>
      %179 = tpu.matmul %166, %134, %cst_86 {dimension_numbers = #tpu.dot_dimension_numbers<[1], [0], [0], [1], [0, 0, 1, 1], [], []>} : vector<16x16xbf16>, vector<16x16xbf16>, vector<16x16xf32> -> vector<16x16xf32>
      %c0_87 = arith.constant 0 : index
      %c32_88 = arith.constant 32 : index
      %180 = vector.load %arg11[%c0_87, %c32_88] : memref<16x64xf32, #tpu.memory_space<vmem>>, vector<16x16xf32>
      %181 = vector.broadcast %162 : vector<16x1xf32> to vector<16x16xf32>
      %182 = arith.mulf %181, %180 : vector<16x16xf32>
      %183 = arith.addf %182, %179 : vector<16x16xf32>
      %c0_89 = arith.constant 0 : index
      %c32_90 = arith.constant 32 : index
      %184 = vector.load %arg11[%c0_89, %c32_90] : memref<16x64xf32, #tpu.memory_space<vmem>>, vector<16x16xf32>
      tpu.vector_store %arg11[%c0_89, %c32_90], %183 {strides = array<i32>} : memref<16x64xf32, #tpu.memory_space<vmem>>, vector<16x16xf32>,
      %c0_91 = arith.constant 0 : index
      %c0_92 = arith.constant 0 : index
      %c112 = arith.constant 112 : index
      %185 = vector.load %arg4[%c0_91, %c0_92, %c112] : memref<1x16x192xbf16, #tpu.memory_space<vmem>>, vector<1x16x16xbf16>
      %186 = vector.shape_cast %185 : vector<1x16x16xbf16> to vector<16x16xbf16>
      %187 = arith.extf %186 : vector<16x16xbf16> to vector<16x16xf32>
      %c0_93 = arith.constant 0 : index
      %c0_94 = arith.constant 0 : index
      %c176 = arith.constant 176 : index
      %188 = vector.load %arg4[%c0_93, %c0_94, %c176] : memref<1x16x192xbf16, #tpu.memory_space<vmem>>, vector<1x16x16xbf16>
      %189 = vector.shape_cast %188 : vector<1x16x16xbf16> to vector<16x16xbf16>
      %190 = arith.mulf %187, %187 : vector<16x16xf32>
      %cst_95 = arith.constant dense<0.000000e+00> : vector<16xf32>
      %191 = vector.multi_reduction <add>, %190, %cst_95 [1] : vector<16x16xf32> to vector<16xf32>
      %192 = vector.shape_cast %191 : vector<16xf32> to vector<16x1xf32>
      %cst_96 = arith.constant 1.600000e+01 : f32
      %193 = vector.broadcast %cst_96 : f32 to vector<16x1xf32>
      %194 = arith.divf %192, %193 : vector<16x1xf32>
      %cst_97 = arith.constant 1.1920929E-7 : f32
      %195 = vector.broadcast %cst_97 : f32 to vector<16x1xf32>
      %196 = arith.addf %194, %195 : vector<16x1xf32>
      %197 = math.rsqrt %196 : vector<16x1xf32>
      %198 = vector.broadcast %197 : vector<16x1xf32> to vector<16x16xf32>
      %199 = arith.mulf %187, %198 : vector<16x16xf32>
      %200 = vector.extract_strided_slice %199 {offsets = [0, 8], sizes = [16, 8], strides = [1, 1]} : vector<16x16xf32> to vector<16x8xf32>
      %201 = vector.extract_strided_slice %199 {offsets = [0, 0], sizes = [16, 8], strides = [1, 1]} : vector<16x16xf32> to vector<16x8xf32>
      %202 = tpu.concatenate %200, %201 in 1 : vector<16x8xf32>, vector<16x8xf32> -> vector<16x16xf32>
      %203 = arith.mulf %199, %10 : vector<16x16xf32>
      %204 = arith.mulf %202, %12 : vector<16x16xf32>
      %205 = arith.addf %203, %204 : vector<16x16xf32>
      %206 = arith.truncf %205 : vector<16x16xf32> to vector<16x16xbf16>
      %c0_98 = arith.constant 0 : index
      %c48 = arith.constant 48 : index
      %207 = vector.load %arg10[%c0_98, %c48] : memref<16x64xbf16, #tpu.memory_space<vmem>>, vector<16x16xbf16>
      %cst_99 = arith.constant dense<0.000000e+00> : vector<16x16xf32>
      %208 = tpu.matmul %207, %206, %cst_99 {dimension_numbers = #tpu.dot_dimension_numbers<[1], [1], [0], [0], [0, 0, 1, 0], [], []>} : vector<16x16xbf16>, vector<16x16xbf16>, vector<16x16xf32> -> vector<16x16xf32>
      %cst_100 = arith.constant 0xFF800000 : f32
      %209 = vector.broadcast %cst_100 : f32 to vector<16x16xf32>
      %210 = arith.select %19, %208, %209 : vector<16x16xi1>, vector<16x16xf32>
      %c3 = arith.constant 3 : index
      %c0_101 = arith.constant 0 : index
      %c0_102 = arith.constant 0 : index
      %211 = vector.load %arg12[%c3, %c0_101, %c0_102] : memref<4x16x1xf32, #tpu.memory_space<vmem>>, vector<1x16x1xf32>
      %212 = vector.shape_cast %211 : vector<1x16x1xf32> to vector<16x1xf32>
      %cst_103 = arith.constant dense<0xFF800000> : vector<16xf32>
      %213 = vector.multi_reduction <maximumf>, %210, %cst_103 [1] : vector<16x16xf32> to vector<16xf32>
      %214 = vector.shape_cast %213 : vector<16xf32> to vector<16x1xf32>
      %215 = arith.maximumf %212, %214 : vector<16x1xf32>
      %216 = arith.subf %212, %215 : vector<16x1xf32>
      %217 = math.exp %216 : vector<16x1xf32>
      %218 = vector.broadcast %215 : vector<16x1xf32> to vector<16x16xf32>
      %219 = arith.subf %210, %218 : vector<16x16xf32>
      %220 = math.exp %219 : vector<16x16xf32>
      %221 = arith.truncf %220 : vector<16x16xf32> to vector<16x16xbf16>
      %c3_104 = arith.constant 3 : index
      %c0_105 = arith.constant 0 : index
      %c0_106 = arith.constant 0 : index
      %222 = vector.load %arg13[%c3_104, %c0_105, %c0_106] : memref<4x16x1xf32, #tpu.memory_space<vmem>>, vector<1x16x1xf32>
      %223 = vector.shape_cast %222 : vector<1x16x1xf32> to vector<16x1xf32>
      %224 = arith.mulf %217, %223 : vector<16x1xf32>
      %cst_107 = arith.constant dense<0.000000e+00> : vector<16xf32>
      %225 = vector.multi_reduction <add>, %220, %cst_107 [1] : vector<16x16xf32> to vector<16xf32>
      %226 = vector.shape_cast %225 : vector<16xf32> to vector<16x1xf32>
      %227 = arith.addf %224, %226 : vector<16x1xf32>
      %c3_108 = arith.constant 3 : index
      %c0_109 = arith.constant 0 : index
      %c0_110 = arith.constant 0 : index
      %228 = vector.load %arg13[%c3_108, %c0_109, %c0_110] : memref<4x16x1xf32, #tpu.memory_space<vmem>>, vector<1x16x1xf32>
      %229 = vector.shape_cast %228 : vector<1x16x1xf32> to vector<16x1xf32>
      %230 = vector.shape_cast %227 : vector<16x1xf32> to vector<1x16x1xf32>
      tpu.vector_store %arg13[%c3_108, %c0_109, %c0_110], %230 {strides = array<i32>} : memref<4x16x1xf32, #tpu.memory_space<vmem>>, vector<1x16x1xf32>,
      %c3_111 = arith.constant 3 : index
      %c0_112 = arith.constant 0 : index
      %c0_113 = arith.constant 0 : index
      %231 = vector.load %arg12[%c3_111, %c0_112, %c0_113] : memref<4x16x1xf32, #tpu.memory_space<vmem>>, vector<1x16x1xf32>
      %232 = vector.shape_cast %231 : vector<1x16x1xf32> to vector<16x1xf32>
      %233 = vector.shape_cast %215 : vector<16x1xf32> to vector<1x16x1xf32>
      tpu.vector_store %arg12[%c3_111, %c0_112, %c0_113], %233 {strides = array<i32>} : memref<4x16x1xf32, #tpu.memory_space<vmem>>, vector<1x16x1xf32>,
      %cst_114 = arith.constant dense<0.000000e+00> : vector<16x16xf32>
      %234 = tpu.matmul %221, %189, %cst_114 {dimension_numbers = #tpu.dot_dimension_numbers<[1], [0], [0], [1], [0, 0, 1, 1], [], []>} : vector<16x16xbf16>, vector<16x16xbf16>, vector<16x16xf32> -> vector<16x16xf32>
      %c0_115 = arith.constant 0 : index
      %c48_116 = arith.constant 48 : index
      %235 = vector.load %arg11[%c0_115, %c48_116] : memref<16x64xf32, #tpu.memory_space<vmem>>, vector<16x16xf32>
      %236 = vector.broadcast %217 : vector<16x1xf32> to vector<16x16xf32>
      %237 = arith.mulf %236, %235 : vector<16x16xf32>
      %238 = arith.addf %237, %234 : vector<16x16xf32>
      %c0_117 = arith.constant 0 : index
      %c48_118 = arith.constant 48 : index
      %239 = vector.load %arg11[%c0_117, %c48_118] : memref<16x64xf32, #tpu.memory_space<vmem>>, vector<16x16xf32>
      tpu.vector_store %arg11[%c0_117, %c48_118], %238 {strides = array<i32>} : memref<16x64xf32, #tpu.memory_space<vmem>>, vector<16x16xf32>,
    } else {
    }
    %6 = arith.cmpi eq, %arg2, %arg1 : i32
    %7 = arith.extui %6 : i1 to i32
    %c0_i32_2 = arith.constant 0 : i32
    %8 = arith.cmpi ne, %7, %c0_i32_2 : i32
    scf.if %8 {
      %c0 = arith.constant 0 : index
      %c0_3 = arith.constant 0 : index
      %c0_4 = arith.constant 0 : index
      %9 = vector.load %arg13[%c0, %c0_3, %c0_4] : memref<4x16x1xf32, #tpu.memory_space<vmem>>, vector<1x16x1xf32>
      %10 = vector.shape_cast %9 : vector<1x16x1xf32> to vector<16x1xf32>
      %11 = tpu.reciprocal %10 {approx = true} : vector<16x1xf32> -> vector<16x1xf32>
      %c0_5 = arith.constant 0 : index
      %c0_6 = arith.constant 0 : index
      %12 = vector.load %arg11[%c0_5, %c0_6] : memref<16x64xf32, #tpu.memory_space<vmem>>, vector<16x16xf32>
      %13 = vector.broadcast %11 : vector<16x1xf32> to vector<16x16xf32>
      %14 = arith.mulf %12, %13 : vector<16x16xf32>
      %c0_7 = arith.constant 0 : index
      %c0_8 = arith.constant 0 : index
      %15 = vector.load %arg11[%c0_7, %c0_8] : memref<16x64xf32, #tpu.memory_space<vmem>>, vector<16x16xf32>
      tpu.vector_store %arg11[%c0_7, %c0_8], %14 {strides = array<i32>} : memref<16x64xf32, #tpu.memory_space<vmem>>, vector<16x16xf32>,
      %c1 = arith.constant 1 : index
      %c0_9 = arith.constant 0 : index
      %c0_10 = arith.constant 0 : index
      %16 = vector.load %arg13[%c1, %c0_9, %c0_10] : memref<4x16x1xf32, #tpu.memory_space<vmem>>, vector<1x16x1xf32>
      %17 = vector.shape_cast %16 : vector<1x16x1xf32> to vector<16x1xf32>
      %18 = tpu.reciprocal %17 {approx = true} : vector<16x1xf32> -> vector<16x1xf32>
      %c0_11 = arith.constant 0 : index
      %c16 = arith.constant 16 : index
      %19 = vector.load %arg11[%c0_11, %c16] : memref<16x64xf32, #tpu.memory_space<vmem>>, vector<16x16xf32>
      %20 = vector.broadcast %18 : vector<16x1xf32> to vector<16x16xf32>
      %21 = arith.mulf %19, %20 : vector<16x16xf32>
      %c0_12 = arith.constant 0 : index
      %c16_13 = arith.constant 16 : index
      %22 = vector.load %arg11[%c0_12, %c16_13] : memref<16x64xf32, #tpu.memory_space<vmem>>, vector<16x16xf32>
      tpu.vector_store %arg11[%c0_12, %c16_13], %21 {strides = array<i32>} : memref<16x64xf32, #tpu.memory_space<vmem>>, vector<16x16xf32>,
      %c2 = arith.constant 2 : index
      %c0_14 = arith.constant 0 : index
      %c0_15 = arith.constant 0 : index
      %23 = vector.load %arg13[%c2, %c0_14, %c0_15] : memref<4x16x1xf32, #tpu.memory_space<vmem>>, vector<1x16x1xf32>
      %24 = vector.shape_cast %23 : vector<1x16x1xf32> to vector<16x1xf32>
      %25 = tpu.reciprocal %24 {approx = true} : vector<16x1xf32> -> vector<16x1xf32>
      %c0_16 = arith.constant 0 : index
      %c32 = arith.constant 32 : index
      %26 = vector.load %arg11[%c0_16, %c32] : memref<16x64xf32, #tpu.memory_space<vmem>>, vector<16x16xf32>
      %27 = vector.broadcast %25 : vector<16x1xf32> to vector<16x16xf32>
      %28 = arith.mulf %26, %27 : vector<16x16xf32>
      %c0_17 = arith.constant 0 : index
      %c32_18 = arith.constant 32 : index
      %29 = vector.load %arg11[%c0_17, %c32_18] : memref<16x64xf32, #tpu.memory_space<vmem>>, vector<16x16xf32>
      tpu.vector_store %arg11[%c0_17, %c32_18], %28 {strides = array<i32>} : memref<16x64xf32, #tpu.memory_space<vmem>>, vector<16x16xf32>,
      %c3 = arith.constant 3 : index
      %c0_19 = arith.constant 0 : index
      %c0_20 = arith.constant 0 : index
      %30 = vector.load %arg13[%c3, %c0_19, %c0_20] : memref<4x16x1xf32, #tpu.memory_space<vmem>>, vector<1x16x1xf32>
      %31 = vector.shape_cast %30 : vector<1x16x1xf32> to vector<16x1xf32>
      %32 = tpu.reciprocal %31 {approx = true} : vector<16x1xf32> -> vector<16x1xf32>
      %c0_21 = arith.constant 0 : index
      %c48 = arith.constant 48 : index
      %33 = vector.load %arg11[%c0_21, %c48] : memref<16x64xf32, #tpu.memory_space<vmem>>, vector<16x16xf32>
      %34 = vector.broadcast %32 : vector<16x1xf32> to vector<16x16xf32>
      %35 = arith.mulf %33, %34 : vector<16x16xf32>
      %c0_22 = arith.constant 0 : index
      %c48_23 = arith.constant 48 : index
      %36 = vector.load %arg11[%c0_22, %c48_23] : memref<16x64xf32, #tpu.memory_space<vmem>>, vector<16x16xf32>
      tpu.vector_store %arg11[%c0_22, %c48_23], %35 {strides = array<i32>} : memref<16x64xf32, #tpu.memory_space<vmem>>, vector<16x16xf32>,
      %c0_24 = arith.constant 0 : index
      %c0_25 = arith.constant 0 : index
      %37 = vector.load %arg11[%c0_24, %c0_25] : memref<16x64xf32, #tpu.memory_space<vmem>>, vector<16x64xf32>
      %38 = arith.truncf %37 : vector<16x64xf32> to vector<16x64xbf16>
      %c0_26 = arith.constant 0 : index
      %c0_27 = arith.constant 0 : index
      %c0_28 = arith.constant 0 : index
      %39 = vector.load %arg9[%c0_26, %c0_27, %c0_28] : memref<1x16x64xbf16, #tpu.memory_space<vmem>>, vector<1x16x64xbf16>
      %40 = vector.shape_cast %39 : vector<1x16x64xbf16> to vector<16x64xbf16>
      %41 = vector.shape_cast %38 : vector<16x64xbf16> to vector<1x16x64xbf16>
      tpu.vector_store %arg9[%c0_26, %c0_27, %c0_28], %41 {strides = array<i32>} : memref<1x16x64xbf16, #tpu.memory_space<vmem>>, vector<1x16x64xbf16>,
    } else {
    }
    return
  }
  func.func @transform_0(%arg0: i32, %arg1: i32, %arg2: i32) -> (i32, i32, i32) {
    %c0_i32 = arith.constant 0 : i32
    %c0_i32_0 = arith.constant 0 : i32
    return %arg0, %arg1, %c0_i32 : i32, i32, i32
  }
  func.func @transform_1(%arg0: i32, %arg1: i32, %arg2: i32) -> (i32, i32, i32) {
    %0 = arith.minsi %arg2, %arg1 : i32
    %c0_i32 = arith.constant 0 : i32
    %c0_i32_0 = arith.constant 0 : i32
    return %arg0, %0, %c0_i32 : i32, i32, i32
  }
  func.func @transform_2(%arg0: i32, %arg1: i32, %arg2: i32) -> (i32, i32) {
    %c0_i32 = arith.constant 0 : i32
    %c0_i32_0 = arith.constant 0 : i32
    return %arg1, %c0_i32 : i32, i32
  }
  func.func @transform_3(%arg0: i32, %arg1: i32, %arg2: i32) -> (i32, i32) {
    %c0_i32 = arith.constant 0 : i32
    %c0_i32_0 = arith.constant 0 : i32
    return %arg1, %c0_i32 : i32, i32
  }
  func.func @transform_4(%arg0: i32, %arg1: i32, %arg2: i32) -> (i32, i32) {
    %0 = arith.minsi %arg2, %arg1 : i32
    %c0_i32 = arith.constant 0 : i32
    %c0_i32_0 = arith.constant 0 : i32
    return %0, %c0_i32 : i32, i32
  }
  func.func @transform_5(%arg0: i32, %arg1: i32, %arg2: i32) -> (i32, i32) {
    %0 = arith.minsi %arg2, %arg1 : i32
    %c0_i32 = arith.constant 0 : i32
    %c0_i32_0 = arith.constant 0 : i32
    return %0, %c0_i32 : i32, i32
  }
  func.func @transform_6(%arg0: i32, %arg1: i32, %arg2: i32) -> (i32, i32, i32) {
    %c0_i32 = arith.constant 0 : i32
    %c0_i32_0 = arith.constant 0 : i32
    return %arg0, %arg1, %c0_i32 : i32, i32, i32
  }
}

</mosaic_0001>

<bundles_post_ra>
// kernel: mixer_attention_forward.2
= control target key start
LH: loop header
LB: loop body
LE: loop exit
PB: predicated region body
PF: predicated region fallthrough
CT: control target
= control target key end

     0   :  { %v224_v1 = vmov 0   ;;  %vm71_vm0 = vcmask 261120   ;;  %vm17_vm1 = vcmask 523264   ;;  %v225_v7 = vmov 0.0   ;;  %s279_s1 = inlined_call_operand.vmem [shape: bf16[32,192], index: 1, kind: input, shape index: {}]   ;;  %s280_s0 = inlined_call_operand.vmem [shape: bf16[32,32], index: 0, kind: input, shape index: {}]   ;;  %s281_s2 = inlined_call_operand.vmem [shape: bf16[32,192], index: 2, kind: output, shape index: {}]  }
   0x1   :  { %v216_v0 = vld [vmem:[%s279_s1 + $0x14] ss:$8 sps:$4 sm:$0xff]   ;;  %110 = vmatprep.mubr.bf16.mxu0 %v224_v1  ;;  %120 = vmatprep.mubr.bf16.mxu1 %v224_v1  ;;  %v218_v2 = vld [vmem:[%s279_s1 + $0x10] ss:$8 sps:$4 sm:$0xff]   ;;  %v219_v3 = vld [vmem:[%s279_s1 + $0x4] ss:$8 sps:$4 sm:$0xff]  }
   0x2   :  { %90 = vmatprep.subr.bf16.mxu0 %v216_v0  ;;  %210 = vmatprep.subr.bf16.mxu1 %v216_v0  ;;  %v221_v4 = vld [vmem:[%s279_s1] ss:$8 sps:$4 sm:$0xff]   ;;  %18 = vst.msk [vmem:[#allocation2 + $0x8] sm:$0xff] %vm17_vm1, %v225_v7  ;;  %20 = vst.msk [vmem:[#allocation2 + $0x18] sm:$0xff] %vm17_vm1, %v225_v7  ;;  %vm183_vm2 = vcmask 1043456   ;;  %vm184_vm3 = vcmask 523268  }
   0x3   :  { %91 = vmatpush1.bf16.msra.mxu0 %v218_v2  ;;  %212 = vmatpush1.bf16.msra.mxu1 %v218_v2  ;;  %v222_v5 = vld [vmem:[%s280_s0] sm:$0xff]   ;;  %v223_v6 = vld [vmem:[%s280_s0 + $0x8] sm:$0xff]   ;;  %22 = vst.msk [vmem:[#allocation2 + $0x28] sm:$0xff] %vm17_vm1, %v225_v7  ;;  %24 = vst.msk [vmem:[#allocation2 + $0x38] sm:$0xff] %vm17_vm1, %v225_v7 }
   0x4   :  { %92 = vmatprep.subr.bf16.mxu0 %v219_v3  ;;  %211 = vmatprep.subr.bf16.mxu1 %v219_v3  ;;  %vm185_vm4 = vmor %vm184_vm3, %vm183_vm2 }
   0x7   :  { %93 = vmatpush1.bf16.msra.mxu0 %v221_v4  ;;  %213 = vmatpush1.bf16.msra.mxu1 %v221_v4 }
   0x9   :  { %v26_v10 = vld [vmem:[#allocation2 + $0x8] sm:$0xff]  ;;  %v28_v18 = vld [vmem:[#allocation2 + $0x18] sm:$0xff] }
   0xa   :  { %200 = vmatmul.mubr.msk.bf16.vlgmr.msra.gmra.mxu0 %vm71_vm0, %v222_v5  ;;  %201 = vmatmul.mubr.msk.bf16.vlgmr.msra.gmra.mxu1 %vm71_vm0, %v223_v6  ;;  %v30_v11 = vld [vmem:[#allocation2 + $0x28] sm:$0xff]  ;;  %v32_v19 = vld [vmem:[#allocation2 + $0x38] sm:$0xff] }
  0xca   :  { %v112_v8 = vpop.f32.mrf.mxu0  ;;  %v122_v9 = vpop.f32.mrf.mxu1 }
  0xcc   :  { %v114_v12 = vpop.f32.mrf.mxu0  ;;  %v124_v13 = vpop.f32.mrf.mxu1 }
  0xcd   :  { %v132_v14 = vadd.f32 %v114_v12, %v26_v10  ;;  %v136_v15 = vadd.f32 %v124_v13, %v30_v11 }
  0xce   :  { %v116_v16 = vpop.f32.mrf.mxu0  ;;  %v126_v17 = vpop.f32.mrf.mxu1 }
  0xcf   :  { %141 = vst.msk [vmem:[#allocation2 + $0x8] sm:$0xff] %vm17_vm1, %v132_v14  ;;  %145 = vst.msk [vmem:[#allocation2 + $0x28] sm:$0xff] %vm17_vm1, %v136_v15 }
  0xd0   :  { %v118_v20 = vpop.f32.mrf.mxu0  ;;  %v128_v21 = vpop.f32.mrf.mxu1 }
  0xd1   :  { %v134_v22 = vadd.f32 %v118_v20, %v28_v18  ;;  %v138_v23 = vadd.f32 %v128_v21, %v32_v19 }
  0xd3   :  { %143 = vst.msk [vmem:[#allocation2 + $0x18] sm:$0xff] %vm17_vm1, %v134_v22  ;;  %147 = vst.msk [vmem:[#allocation2 + $0x38] sm:$0xff] %vm17_vm1, %v138_v23 }
  0xd6   :  { %v152_v24 = vld [vmem:[#allocation2 + $0x8] sm:$0xff] }
  0xd7   :  { %v156_v25 = vld [vmem:[#allocation2 + $0x28] sm:$0xff]  ;;  %v206_v26 = vpack.c.bf16 %v152_v24, %v112_v8 }
  0xd8   :  { %v208_v27 = vpack.c.bf16 %v156_v25, %v122_v9 }
  0xd9   :  { %186 = vst.msk [vmem:[%s281_s2] sm:$0xff] %vm185_vm4, %v206_v26 }
  0xda   :  { %188 = vst.msk [vmem:[%s281_s2 + $0x10] sm:$0xff] %vm185_vm4, %v208_v27  ;;  %v154_v28 = vld [vmem:[#allocation2 + $0x18] sm:$0xff] }
  0xdb   :  { %v158_v29 = vld [vmem:[#allocation2 + $0x38] sm:$0xff]  ;;  %v207_v30 = vpack.c.bf16 %v154_v28, %v116_v16 }
  0xdc   :  { %v209_v31 = vpack.c.bf16 %v158_v29, %v126_v17 }
  0xdd   :  { %187 = vst.msk [vmem:[%s281_s2 + $0x8] sm:$0xff] %vm185_vm4, %v207_v30 }
  0xde   :  { %189 = vst.msk [vmem:[%s281_s2 + $0x18] sm:$0xff] %vm185_vm4, %v209_v31 }

// kernel: mixer_attention_forward.3
= control target key start
LH: loop header
LB: loop body
LE: loop exit
PB: predicated region body
PF: predicated region fallthrough
CT: control target
= control target key end

     0   :  { %11 = vsyncpa [#allocation7], 0  ;;  %s3334_s0 = inlined_call_operand.vmem [shape: bf16[2,16,192], index: 0, kind: input, shape index: {}, may-alias: {0,1}]   ;;  %s3335_s1 = inlined_call_operand.vmem [shape: bf16[2,16,192], index: 1, kind: input, shape index: {}, may-alias: {0,1}]   ;;  %s3336_s2 = inlined_call_operand.vmem [shape: bf16[16,16], index: 2, kind: input, shape index: {}, may-alias: {2,4}]   ;;  %s3337_s3 = inlined_call_operand.vmem [shape: bf16[16,16], index: 3, kind: input, shape index: {}, may-alias: {3,5}]   ;;  %s3338_s4 = inlined_call_operand.vmem [shape: bf16[16,16], index: 4, kind: input, shape index: {}, may-alias: {2,4}]   ;;  %s3339_s5 = inlined_call_operand.vmem [shape: bf16[16,16], index: 5, kind: input, shape index: {}, may-alias: {3,5}]   ;;  %s3340_s6 = inlined_call_operand.hbm [shape: bf16[2,16,64], index: 6, kind: output, shape index: {}]  }
   0x1   :  { %13 = vsyncpa [#allocation7 + $0x1], 0  ;;  %s2589_s21 = smov 0   ;;  %s2591_s22 = smov 0  }
   0x2   :  { %s2593_s23 = smov 0   ;;  %s2595_s24 = smov 0  }
   0x3   :  { %s2597_s25 = smov 0   ;;  %s2599_s26 = smov 0  }
   0x4 LB: > { %s2117_s27 = sadd.s32 4294967295, %s2531_s26   ;;  %s2118_s28 = sadd.s32 4294967294, %s2531_s26   ;;  %s2531_s26 = sphi %s2599_s26, %s19_s26   ;;  %s2527_s25 = sphi %s2597_s25, %s3347_s25   ;;  %s2523_s24 = sphi %s2595_s24, %s3346_s24   ;;  %s2519_s23 = sphi %s2593_s23, %s3345_s23   ;;  %s2515_s22 = sphi %s2591_s22, %s3344_s22   ;;  %s2511_s21 = sphi %s2589_s21, %s3343_s21  }
   0x5   : > { %s38_s29 = sadd.s32 1, %s2527_s25  ;;  %s219_s30 = sadd.s32 1, %s2519_s23 }
   0x6   : > { %p40_p0 = scmp.ge.s32.totalorder %s38_s29, 2  ;;  %p229_p1 = scmp.ne.s32.totalorder %s2519_s23, %s2515_s22 }
   0x7   : > { %p230_p2 = scmp.eq.s32.totalorder %s2117_s27, 1  ;;  %p235_p3 = scmp.ne.s32.totalorder %s2515_s22, %s2511_s21 }
   0x8   : > { %s3349_s29 = smov (%p40_p0, %s38_s29), 0  ;;  %p236_p5 = scmp.eq.s32.totalorder %s2118_s28, 1 }
   0x9   : > { %p2629_p4 = por %p230_p2, %p229_p1  ;;  %s214_s8 = ssub.s32 %s2527_s25, %s3349_s29 }
   0xa   : > { %p2125_p6 = scmp.ge.s32.totalorder %s2531_s26, 1  ;;  %p217_p7 = scmp.eq.s32.totalorder %s214_s8, 0 }
   0xb   : > { %p2636_p8 = por %p236_p5, %p235_p3  ;;  %p330_p9 = scmp.lt.s32.totalorder %s2531_s26, 3 }
   0xc   : > { %s2642_s10 = scalar_select %p217_p7, %s2519_s23, %s219_s30  }
   0xd   : > { %p331_p10 = pnand %p2125_p6, %p330_p9 }
   0xe   : > { %p402_p11 = scmp.lt.s32.totalorder (!%p331_p10), %s2523_s24, 1  ;;  %s2533_s19 = smov (!%p331_p10), 64  }
   0xf   : > { %334 = sbr.rel (%p331_p10) target bundleno = 2230 (0x8b6), region = 44  ;;  %s2534_s20 = smov (!%p331_p10), 112  }
  0x10   : > { %s2535_s27 = smov (!%p331_p10), 96   ;;  %s2536_s28 = smov (!%p331_p10), 80  }
  0x11   : > { %s2537_s30 = smov (!%p331_p10), 56   ;;  %s2538_s8 = smov (!%p331_p10), 72  }
  0x12   : > { %s2541_s13 = smov (!%p331_p10), 88   ;;  %s2543_s17 = smov (!%p331_p10), 16  }
  0x14   : > { %s403_s11 = scalar_select %p402_p11, %s2523_s24, 1  ;;  %vm479_vm0 = vcmask 130048   ;;  %vm509_vm1 = vcmask 64512   ;;  %vm2547_vm2 = vmmov 0   ;;  %vm528_vm3 = vcmask 125952  }
  0x15   : > { %vm607_vm4 = vcmask 257152   ;;  %vm684_vm5 = vcmask 388352   ;;  %vm761_vm6 = vcmask 519552   ;;  %vm767_vm7 = vcmask 7168  }
  0x16   : > { %s2162_s12 = sshll.u32 %s403_s11, 4  ;;  %s2539_s11 = smov 104   ;;  %vm764_vm10 = vcmask 523264   ;;  %vm1312_vm11 = vcmask 261248   ;;  %vm1570_vm12 = vcmask 392448   ;;  %vm1828_vm13 = vcmask 523648  }
  0x17   : > { %s2649_s15 = scalar_lea.vmem %s3335_s1, %s2162_s12  ;;  %s2654_s18 = scalar_lea.vmem %s3334_s0, %s2162_s12  ;;  %vm1932_vm14 = vcmask 519168  }
  0x18   : > { %v808_v0 = vld [vmem:[%s2649_s15] ss:$8 sps:$4 sm:$0xff]   ;;  %s2540_s12 = smov 120  }
  0x19   : > { %v531_v1 = vld [vmem:[%s2654_s18] ss:$8 sps:$4 sm:$0xff]   ;;  %v2658_v2 = vunpack.c.l.bf16 %v808_v0  ;;  %v2660_v3 = vunpack.c.h.bf16 %v808_v0 }
  0x1a   : > { %v2662_v4 = vunpack.c.l.bf16 %v531_v1  ;;  %v2664_v5 = vunpack.c.h.bf16 %v531_v1  ;;  %v610_v6 = vld [vmem:[%s2654_s18] ss:$8 sps:$4 sm:$0xff]  }
  0x1b   : > { %v814_v7 = vmul.f32 %v2658_v2, %v2658_v2  ;;  %v815_v9 = vmul.f32 %v2660_v3, %v2660_v3  ;;  %v2677_v11 = vunpack.c.l.bf16 %v610_v6  ;;  %v2679_v12 = vunpack.c.h.bf16 %v610_v6  ;;  %v687_v13 = vld [vmem:[%s2654_s18] ss:$8 sps:$4 sm:$0xff]  }
  0x1c   : > { %v535_v8 = vmul.f32 %v2662_v4, %v2662_v4  ;;  %v536_v10 = vmul.f32 %v2664_v5, %v2664_v5  ;;  %v2688_v16 = vunpack.c.l.bf16 %v687_v13  ;;  %v2690_v17 = vunpack.c.h.bf16 %v687_v13  ;;  %v473_v46 = vld [vmem:[%s2654_s18] ss:$8 sps:$4 sm:$0xff]   ;;  %s2544_s18 = smov 48  }
  0x1d   : > { %818 = vrot.lane.b32.xlu0 %v814_v7, %s2533_s19  ;;  %v614_v14 = vmul.f32 %v2677_v11, %v2677_v11  ;;  %v615_v15 = vmul.f32 %v2679_v12, %v2679_v12  ;;  %v2723_v47 = vunpack.c.l.bf16 %v473_v46  ;;  %v2728_v54 = vunpack.c.h.bf16 %v473_v46  ;;  %v2790_v46 = vld [vmem:[%s3336_s2] sm:$0xff]  }
  0x1e   : > { %539 = vrot.lane.b32.xlu1 %v535_v8, %s2534_s20  ;;  %v691_v18 = vmul.f32 %v2688_v16, %v2688_v16  ;;  %v692_v19 = vmul.f32 %v2690_v17, %v2690_v17 }
  0x1f   : > { %v477_v49 = vmul.f32 %v2723_v47, %v2723_v47  ;;  %v478_v57 = vmul.f32 %v2728_v54, %v2728_v54 }
  0x21   : > { %820 = vrot.lane.b32.xlu0 %v815_v9, %s2533_s19  ;;  %v480_v52 = vsel %vm479_vm0, %v477_v49, 0.0  ;;  %v483_v61 = vsel %vm479_vm0, %v478_v57, 0.0  ;;  %v2180_v57 = vld [vmem:[%s3337_s3] sm:$0xff]  }
  0x22   : > { %541 = vrot.lane.b32.xlu1 %v536_v10, %s2534_s20 }
  0x25   : > { %618 = vrot.lane.b32.xlu0 %v614_v14, %s2535_s27 }
  0x26   : > { %620 = vrot.lane.b32.xlu1 %v615_v15, %s2535_s27 }
  0x29   : > { %695 = vrot.lane.b32.xlu0 %v691_v18, %s2536_s28 }
  0x2a   : > { %697 = vrot.lane.b32.xlu1 %v692_v19, %s2536_s28 }
  0x8f   : > { %v819_v20 = vpop.permute.xlu0 %818 }
  0x90   : > { %v540_v21 = vpop.permute.xlu1 %539  ;;  %v825_v22 = vsel %vm479_vm0, %v819_v20, 0.0 }
  0x91   : > { %826 = vadd.xlane.f32.xlu0 %v825_v22  ;;  %v545_v23 = vsel %vm479_vm0, %v540_v21, 0.0  ;;  %v2184_v21 = vld [vmem:[%s3338_s4] sm:$0xff]  }
  0x92   : > { %v2185_v22 = vunpack.c.l.bf16 %v2184_v21 }
  0x93   : > { %v821_v24 = vpop.permute.xlu0 %820 }
  0x94   : > { %v542_v25 = vpop.permute.xlu1 %541  ;;  %v828_v26 = vsel %vm479_vm0, %v821_v24, 0.0  ;;  %v2188_v24 = vld [vmem:[%s3339_s5] sm:$0xff]  }
  0x95   : > { %829 = vadd.xlane.f32.xlu1 %v828_v26  ;;  %546 = vadd.xlane.f32.xlu0 %v545_v23  ;;  %v548_v27 = vsel %vm479_vm0, %v542_v25, 0.0  ;;  %v2186_v23 = vunpack.c.h.bf16 %v2184_v21  ;;  %v2777_v25 = vunpack.c.l.bf16 %v2188_v24  ;;  %v1316_v21 = vld [vmem:[%s2649_s15] ss:$8 sps:$4 sm:$0xff]  }
  0x97   : > { %v619_v28 = vpop.permute.xlu0 %618 }
  0x98   : > { %v621_v29 = vpop.permute.xlu1 %620  ;;  %v624_v30 = vsel %vm479_vm0, %v619_v28, 0.0 }
  0x99   : > { %549 = vadd.xlane.f32.xlu0 %v548_v27  ;;  %625 = vadd.xlane.f32.xlu1 %v624_v30  ;;  %v627_v31 = vsel %vm479_vm0, %v621_v29, 0.0  ;;  %v2781_v30 = vunpack.c.h.bf16 %v2188_v24  ;;  %v2843_v24 = vunpack.c.l.bf16 %v1316_v21 }
  0x9b   : > { %v696_v32 = vpop.permute.xlu0 %695 }
  0x9c   : > { %v698_v33 = vpop.permute.xlu1 %697  ;;  %v701_v34 = vsel %vm479_vm0, %v696_v32, 0.0 }
  0x9d   : > { %628 = vadd.xlane.f32.xlu0 %v627_v31  ;;  %702 = vadd.xlane.f32.xlu1 %v701_v34  ;;  %v704_v35 = vsel %vm479_vm0, %v698_v33, 0.0 }
  0xa1   : > { %705 = vadd.xlane.f32.xlu0 %v704_v35 }
 0x11a   : > { %v827_v36 = vpop.xlane.xlu0 %826 }
 0x11b   : > { %v832_v37 = vmul.f32 0.0625, %v827_v36 }
 0x11d   : > { %v834_v38 = vadd.f32 1.1920929e-07, %v832_v37 }
 0x11e   : > { %v830_v39 = vpop.xlane.xlu1 %829  ;;  %v547_v48 = vpop.xlane.xlu0 %546 }
 0x11f   : > { %2375 = vrsqrt.f32 %v834_v38  ;;  %v833_v40 = vmul.f32 0.0625, %v830_v39  ;;  %v551_v50 = vmul.f32 0.0625, %v547_v48 }
 0x121   : > { %v835_v41 = vadd.f32 1.1920929e-07, %v833_v40  ;;  %v553_v53 = vadd.f32 1.1920929e-07, %v551_v50 }
 0x122   : > { %v550_v51 = vpop.xlane.xlu0 %549  ;;  %v626_v56 = vpop.xlane.xlu1 %625 }
 0x123   : > { %2377 = vrsqrt.f32 %v835_v41  ;;  %v552_v55 = vmul.f32 0.0625, %v550_v51  ;;  %v630_v59 = vmul.f32 0.0625, %v626_v56  ;;  %v2177_v51 = vunpack.c.l.bf16 %v2790_v46 }
 0x124   : > { %2379 = vrsqrt.f32 %v553_v53 }
 0x125   : > { %v554_v58 = vadd.f32 1.1920929e-07, %v552_v55  ;;  %v632_v62 = vadd.f32 1.1920929e-07, %v630_v59  ;;  %v2814_v59 = vunpack.c.l.bf16 %v2180_v57 }
 0x126   : > { %v629_v60 = vpop.xlane.xlu0 %628  ;;  %v703_v0 = vpop.xlane.xlu1 %702 }
 0x127   : > { %2381 = vrsqrt.f32 %v554_v58  ;;  %v631_v63 = vmul.f32 0.0625, %v629_v60 }
 0x128   : > { %2383 = vrsqrt.f32 %v632_v62 }
 0x129   : > { %v633_v1 = vadd.f32 1.1920929e-07, %v631_v63  ;;  %v2821_v63 = vunpack.c.h.bf16 %v2180_v57 }
 0x12b   : > { %2385 = vrsqrt.f32 %v633_v1 }
 0x12c   : > { %v2376_v42 = vpop.eup %2375 }
 0x12d   : > { %v2709_v43 = vmul.f32 %v2376_v42, %v2658_v2  ;;  %v707_v2 = vmul.f32 0.0625, %v703_v0 }
 0x12f   : > { %842 = vrot.lane.b32.xlu1 %v2709_v43, %s2537_s30  ;;  %v709_v6 = vadd.f32 1.1920929e-07, %v707_v2 }
 0x130   : > { %v2378_v44 = vpop.eup %2377 }
 0x131   : > { %v2714_v45 = vmul.f32 %v2378_v44, %v2660_v3  ;;  %v706_v3 = vpop.xlane.xlu0 %705  ;;  %v2380_v8 = vpop.eup %2379  ;;  %2387 = vrsqrt.f32 %v709_v6  ;;  %v1057_v6 = vld [vmem:[%s2649_s15] ss:$8 sps:$4 sm:$0xff]  }
 0x132   : > { %v708_v7 = vmul.f32 0.0625, %v706_v3  ;;  %v2734_v9 = vmul.f32 %v2380_v8, %v2662_v4 }
 0x133   : > { %848 = vrot.lane.b32.xlu1 %v2709_v43, %s2538_s8  ;;  %844 = vrot.lane.b32.xlu0 %v2714_v45, %s2537_s30 }
 0x134   : > { %v710_v10 = vadd.f32 1.1920929e-07, %v708_v7  ;;  %v2382_v13 = vpop.eup %2381 }
 0x135   : > { %v2738_v14 = vmul.f32 %v2382_v13, %v2664_v5  ;;  %v2384_v15 = vpop.eup %2383 }
 0x136   : > { %2389 = vrsqrt.f32 %v710_v10  ;;  %v2744_v18 = vmul.f32 %v2384_v15, %v2677_v11  ;;  %v2833_v15 = vunpack.c.l.bf16 %v1057_v6 }
 0x137   : > { %850 = vrot.lane.b32.xlu1 %v2714_v45, %s2538_s8 }
 0x138   : > { %v2386_v4 = vpop.eup %2385 }
 0x139   : > { %v2750_v5 = vmul.f32 %v2386_v4, %v2679_v12 }
 0x13e   : > { %v2388_v19 = vpop.eup %2387 }
 0x13f   : > { %v2755_v20 = vmul.f32 %v2388_v19, %v2688_v16  ;;  %v2769_v16 = vpack.i.bf16 %v2186_v23, %v2185_v22  ;;  %v1063_v23 = vmul.f32 %v2833_v15, %v2833_v15 }
 0x143   : > { %v2390_v11 = vpop.eup %2389 }
 0x144   : > { %v2764_v12 = vmul.f32 %v2390_v11, %v2690_v17 }
 0x152   : > { %481 = vadd.xlane.f32.xlu0 %v480_v52  ;;  %v2178_v52 = vunpack.c.h.bf16 %v2790_v46 }
 0x15b   : > { %484 = vadd.xlane.f32.xlu1 %v483_v61 }
 0x168   : > { %561 = vrot.lane.b32.xlu0 %v2734_v9, %s2539_s11 }
 0x16c   : > { %567 = vrot.lane.b32.xlu0 %v2734_v9, %s2540_s12  ;;  %563 = vrot.lane.b32.xlu1 %v2738_v14, %s2539_s11 }
 0x170   : > { %640 = vrot.lane.b32.xlu0 %v2744_v18, %s2541_s13  ;;  %569 = vrot.lane.b32.xlu1 %v2738_v14, %s2540_s12 }
 0x174   : > { %646 = vrot.lane.b32.xlu0 %v2744_v18, %s2539_s11  ;;  %642 = vrot.lane.b32.xlu1 %v2750_v5, %s2541_s13 }
 0x178   : > { %717 = vrot.lane.b32.xlu0 %v2755_v20, %s2538_s8  ;;  %648 = vrot.lane.b32.xlu1 %v2750_v5, %s2539_s11  ;;  %s2549_s11 = smov 24  }
 0x17c   : > { %723 = vrot.lane.b32.xlu0 %v2755_v20, %s2541_s13  ;;  %719 = vrot.lane.b32.xlu1 %v2764_v12, %s2538_s8  ;;  %s2548_s8 = smov 40  }
 0x180   : > { %2331 = vrot.lane.b32.xlu0 %v2769_v16, %s2533_s19  ;;  %725 = vrot.lane.b32.xlu1 %v2764_v12, %s2541_s13  ;;  %s2542_s13 = smov 8  }
 0x1a1   : > { %v843_v17 = vpop.permute.xlu1 %842 }
 0x1a5   : > { %v849_v26 = vpop.permute.xlu1 %848  ;;  %v845_v29 = vpop.permute.xlu0 %844 }
 0x1a6   : > { %v855_v27 = vsel %vm509_vm1, %v843_v17, %v849_v26  ;;  %v1574_v26 = vld [vmem:[%s2649_s15] ss:$8 sps:$4 sm:$0xff]  }
 0x1a7   : > { %v867_v28 = vmul.f32 %v2777_v25, %v855_v27  ;;  %v1321_v27 = vmul.f32 %v2843_v24, %v2843_v24 }
 0x1a9   : > { %v851_v31 = vpop.permute.xlu1 %850  ;;  %871 = vrot.lane.b32.xlu1 %v867_v28, %s2533_s19  ;;  %v2851_v28 = vunpack.c.l.bf16 %v1574_v26 }
 0x1aa   : > { %v856_v32 = vsel %vm509_vm1, %v845_v29, %v851_v31 }
 0x1ab   : > { %v868_v33 = vmul.f32 %v2781_v30, %v856_v32  ;;  %v1579_v29 = vmul.f32 %v2851_v28, %v2851_v28  ;;  %v2546_v32 = vmov 0.0  }
 0x1ac   : > { %2207 = vmatprep.subr.bf16.mxu0 %v2546_v32  ;;  %2213 = vmatprep.subr.bf16.mxu1 %v2546_v32  ;;  %776 = vst.msk [vmem:[#allocation5] sm:$0xff] %vm767_vm7, %v2546_v32  ;;  %777 = vst.msk [vmem:[#allocation5 + $0x8] sm:$0xff] %vm767_vm7, %v2546_v32 }
 0x1ad   : > { %873 = vrot.lane.b32.xlu0 %v868_v33, %s2533_s19  ;;  %2209 = vmatprep.mubr.msk.bf16.mxu0 %vm2547_vm2, %v2546_v32  ;;  %778 = vst.msk [vmem:[#allocation5 + $0x10] sm:$0xff] %vm767_vm7, %v2546_v32  ;;  %779 = vst.msk [vmem:[#allocation5 + $0x18] sm:$0xff] %vm767_vm7, %v2546_v32 }
 0x1ae   : > { %2215 = vmatprep.mubr.msk.bf16.mxu1 %vm2547_vm2, %v2546_v32  ;;  %780 = vst.msk [vmem:[#allocation5 + $0x20] sm:$0xff] %vm767_vm7, %v2546_v32  ;;  %781 = vst.msk [vmem:[#allocation5 + $0x28] sm:$0xff] %vm767_vm7, %v2546_v32 }
 0x1af   : > { %782 = vst.msk [vmem:[#allocation5 + $0x30] sm:$0xff] %vm767_vm7, %v2546_v32  ;;  %783 = vst.msk [vmem:[#allocation5 + $0x38] sm:$0xff] %vm767_vm7, %v2546_v32 }
 0x1b0   : > { %765 = vst.msk [vmem:[#allocation3] sm:$0xff] %vm764_vm10, %v2546_v32  ;;  %766 = vst.msk [vmem:[#allocation3 + $0x8] sm:$0xff] %vm764_vm10, %v2546_v32 }
 0x1db   : > { %v482_v34 = vpop.xlane.xlu0 %481 }
 0x1dc   : > { %v487_v35 = vmul.f32 0.0625, %v482_v34 }
 0x1de   : > { %v489_v36 = vadd.f32 1.1920929e-07, %v487_v35 }
 0x1df   : > { %v562_v41 = vpop.permute.xlu0 %561 }
 0x1e0   : > { %2391 = vrsqrt.f32 %v489_v36 }
 0x1e3   : > { %v568_v49 = vpop.permute.xlu0 %567 }
 0x1e4   : > { %v485_v37 = vpop.xlane.xlu1 %484  ;;  %v573_v61 = vsel %vm509_vm1, %v562_v41, %v568_v49  ;;  %v2866_v41 = vunpack.c.h.bf16 %v1057_v6  ;;  %v2871_v49 = vunpack.c.h.bf16 %v1316_v21 }
 0x1e5   : > { %v488_v38 = vmul.f32 0.0625, %v485_v37 }
 0x1e7   : > { %v490_v39 = vadd.f32 1.1920929e-07, %v488_v38  ;;  %v641_v55 = vpop.permute.xlu0 %640 }
 0x1e8   : > { %v564_v40 = vpop.permute.xlu1 %563 }
 0x1e9   : > { %2393 = vrsqrt.f32 %v490_v39 }
 0x1eb   : > { %v647_v62 = vpop.permute.xlu0 %646 }
 0x1ec   : > { %v570_v42 = vpop.permute.xlu1 %569  ;;  %v652_v13 = vsel %vm509_vm1, %v641_v55, %v647_v62 }
 0x1ed   : > { %v2392_v44 = vpop.eup %2391  ;;  %v574_v1 = vsel %vm509_vm1, %v564_v40, %v570_v42  ;;  %v662_v19 = vmul.f32 %v2814_v59, %v652_v13 }
 0x1ee   : > { %v2793_v48 = vmul.f32 %v2392_v44, %v2723_v47  ;;  %v2335_v47 = vpack.i.bf16 %v2178_v52, %v2177_v51  ;;  %v586_v8 = vmul.f32 %v2821_v63, %v574_v1  ;;  %v1064_v44 = vmul.f32 %v2866_v41, %v2866_v41 }
 0x1ef   : > { %v718_v3 = vpop.permute.xlu0 %717 }
 0x1f0   : > { %v643_v50 = vpop.permute.xlu1 %642  ;;  %497 = vrot.lane.b32.xlu1 %v2793_v48, %s2540_s12 }
 0x1f3   : > { %v724_v11 = vpop.permute.xlu0 %723 }
 0x1f4   : > { %v649_v53 = vpop.permute.xlu1 %648  ;;  %503 = vrot.lane.b32.xlu1 %v2793_v48, %s2542_s13  ;;  %v729_v22 = vsel %vm509_vm1, %v718_v3, %v724_v11 }
 0x1f5   : > { %v653_v0 = vsel %vm509_vm1, %v643_v50, %v649_v53  ;;  %v739_v17 = vmul.f32 %v2814_v59, %v729_v22  ;;  %v2876_v50 = vunpack.c.h.bf16 %v1574_v26 }
 0x1f6   : > { %v2394_v56 = vpop.eup %2393  ;;  %v663_v7 = vmul.f32 %v2821_v63, %v653_v0 }
 0x1f7   : > { %v2809_v58 = vmul.f32 %v2394_v56, %v2728_v54  ;;  %v585_v54 = vmul.f32 %v2814_v59, %v573_v61  ;;  %v2332_v31 = vpop.permute.xlu0 %2331  ;;  %v512_v56 = vmul.f32 %v2177_v51, %v2793_v48 }
 0x1f8   : > { %2336 = vrot.lane.b32.xlu1 %v2335_v47, %s2543_s17  ;;  %v720_v60 = vpop.permute.xlu1 %719  ;;  %v2334_v33 = vunpack.i.h.bf16 %v2332_v31  ;;  %v2333_v34 = vunpack.i.l.bf16 %v2332_v31 }
 0x1f9   : > { %499 = vrot.lane.b32.xlu0 %v2809_v58, %s2540_s12  ;;  %s2545_s12 = smov 32  }
 0x1fa   : > { %v865_v36 = vmul.f32 %v2333_v34, %v2709_v43  ;;  %v866_v37 = vmul.f32 %v2334_v33, %v2714_v45  ;;  %v1322_v43 = vmul.f32 %v2871_v49, %v2871_v49  ;;  %v1580_v45 = vmul.f32 %v2876_v50, %v2876_v50 }
 0x1fc   : > { %2346 = vrot.lane.b32.xlu1 %v2335_v47, %s2544_s18  ;;  %v726_v2 = vpop.permute.xlu1 %725 }
 0x1fd   : > { %505 = vrot.lane.b32.xlu0 %v2809_v58, %s2542_s13  ;;  %v730_v10 = vsel %vm509_vm1, %v720_v60, %v726_v2 }
 0x1fe   : > { %v740_v4 = vmul.f32 %v2821_v63, %v730_v10 }
 0x200   : > { %589 = vrot.lane.b32.xlu1 %v585_v54, %s2543_s17 }
 0x201   : > { %2341 = vrot.lane.b32.xlu0 %v2335_v47, %s2545_s12 }
 0x204   : > { %668 = vrot.lane.b32.xlu1 %v663_v7, %s2545_s12  ;;  %v513_v7 = vmul.f32 %v2178_v52, %v2809_v58 }
 0x205   : > { %591 = vrot.lane.b32.xlu0 %v586_v8, %s2543_s17 }
 0x208   : > { %745 = vrot.lane.b32.xlu1 %v740_v4, %s2544_s18 }
 0x209   : > { %666 = vrot.lane.b32.xlu0 %v662_v19, %s2545_s12 }
 0x20c   : > { %1067 = vrot.lane.b32.xlu1 %v1063_v23, %s2544_s18 }
 0x20d   : > { %743 = vrot.lane.b32.xlu0 %v739_v17, %s2544_s18 }
 0x210   : > { %1325 = vrot.lane.b32.xlu1 %v1321_v27, %s2545_s12 }
 0x214   : > { %1583 = vrot.lane.b32.xlu1 %v1579_v29, %s2543_s17 }
 0x21b   : > { %v872_v35 = vpop.permute.xlu1 %871 }
 0x21c   : > { %v877_v39 = vadd.f32 %v872_v35, %v865_v36 }
 0x21f   : > { %v874_v38 = vpop.permute.xlu0 %873 }
 0x220   : > { %v878_v40 = vadd.f32 %v874_v38, %v866_v37 }
 0x222   : > { %v879_v42 = vpack.c.bf16 %v878_v40, %v877_v39 }
 0x224   : > { %888 = vrot.lane.b32.xlu0 %v879_v42, %s2533_s19 }
 0x228   : > { %1069 = vrot.lane.b32.xlu0 %v1064_v44, %s2544_s18 }
 0x22c   : > { %1327 = vrot.lane.b32.xlu0 %v1322_v43, %s2545_s12 }
 0x230   : > { %1585 = vrot.lane.b32.xlu0 %v1580_v45, %s2543_s17 }
 0x262   : > { %v498_v53 = vpop.permute.xlu1 %497 }
 0x266   : > { %v504_v47 = vpop.permute.xlu1 %503 }
 0x267   : > { %v510_v55 = vsel %vm509_vm1, %v498_v53, %v504_v47 }
 0x268   : > { %v514_v57 = vmul.f32 %v2814_v59, %v510_v55 }
 0x26a   : > { %v516_v60 = vadd.f32 %v514_v57, %v512_v56  ;;  %v2337_v61 = vpop.permute.xlu1 %2336 }
 0x26b   : > { %v500_v62 = vpop.permute.xlu0 %499  ;;  %v2338_v0 = vunpack.i.l.bf16 %v2337_v61  ;;  %v2339_v59 = vunpack.i.h.bf16 %v2337_v61 }
 0x26c   : > { %v518_v54 = vmul.f32 0.25, %v516_v60 }
 0x26d   : > { %v583_v51 = vmul.f32 %v2338_v0, %v2734_v9  ;;  %v584_v46 = vmul.f32 %v2339_v59, %v2738_v14 }
 0x26e   : > { %v2164_v1 = vpack.c.bf16 %v518_v54, %v518_v54  ;;  %v2347_v2 = vpop.permute.xlu1 %2346 }
 0x26f   : > { %v506_v3 = vpop.permute.xlu0 %505  ;;  %v2349_v11 = vunpack.i.h.bf16 %v2347_v2  ;;  %v2348_v31 = vunpack.i.l.bf16 %v2347_v2 }
 0x270   : > { %529 = vst.msk [vmem:[#allocation2] sm:$0xf] %vm528_vm3, %v2164_v1  ;;  %v511_v6 = vsel %vm509_vm1, %v500_v62, %v506_v3 }
 0x271   : > { %v515_v48 = vmul.f32 %v2821_v63, %v511_v6  ;;  %v738_v29 = vmul.f32 %v2349_v11, %v2764_v12  ;;  %v737_v44 = vmul.f32 %v2348_v31, %v2755_v20 }
 0x272   : > { %v590_v8 = vpop.permute.xlu1 %589 }
 0x273   : > { %v517_v10 = vadd.f32 %v515_v48, %v513_v7  ;;  %v595_v13 = vadd.f32 %v590_v8, %v583_v51  ;;  %v2342_v4 = vpop.permute.xlu0 %2341 }
 0x274   : > { %v2344_v19 = vunpack.i.h.bf16 %v2342_v4  ;;  %v2343_v23 = vunpack.i.l.bf16 %v2342_v4 }
 0x275   : > { %v519_v21 = vmul.f32 0.25, %v517_v10  ;;  %v597_v22 = vmul.f32 0.25, %v595_v13 }
 0x276   : > { %v669_v17 = vpop.permute.xlu1 %668  ;;  %v661_v26 = vmul.f32 %v2344_v19, %v2750_v5  ;;  %v660_v36 = vmul.f32 %v2343_v23, %v2744_v18 }
 0x277   : > { %v2165_v52 = vpack.c.bf16 %v519_v21, %v519_v21  ;;  %v2166_v58 = vpack.c.bf16 %v597_v22, %v597_v22  ;;  %v592_v63 = vpop.permute.xlu0 %591 }
 0x278   : > { %v673_v9 = vadd.f32 %v669_v17, %v661_v26  ;;  %v596_v27 = vadd.f32 %v592_v63, %v584_v46 }
 0x279   : > { %530 = vst.msk [vmem:[#allocation2 + $0x4] sm:$0xf] %vm528_vm3, %v2165_v52 }
 0x27a   : > { %608 = vst.msk [vmem:[#allocation2] sm:$0xf] %vm607_vm4, %v2166_v58  ;;  %v675_v33 = vmul.f32 0.25, %v673_v9  ;;  %v598_v34 = vmul.f32 0.25, %v596_v27  ;;  %v746_v35 = vpop.permute.xlu1 %745 }
 0x27b   : > { %v750_v5 = vadd.f32 %v746_v35, %v738_v29  ;;  %v667_v37 = vpop.permute.xlu0 %666 }
 0x27c   : > { %v2169_v14 = vpack.c.bf16 %v675_v33, %v675_v33  ;;  %v2167_v38 = vpack.c.bf16 %v598_v34, %v598_v34  ;;  %v672_v39 = vadd.f32 %v667_v37, %v660_v36  ;;  %v2550_v37 = vmov -inf  }
 0x27d   : > { %v752_v40 = vmul.f32 0.25, %v750_v5  ;;  %769 = vst.msk [vmem:[#allocation4 + $0x8] sm:$0xff] %vm767_vm7, %v2550_v37  ;;  %768 = vst.msk [vmem:[#allocation4] sm:$0xff] %vm767_vm7, %v2550_v37 }
 0x27e   : > { %609 = vst.msk [vmem:[#allocation2 + $0x4] sm:$0xf] %vm607_vm4, %v2167_v38  ;;  %v674_v42 = vmul.f32 0.25, %v672_v39  ;;  %v1068_v12 = vpop.permute.xlu1 %1067 }
 0x27f   : > { %686 = vst.msk [vmem:[#allocation2 + $0x4] sm:$0xf] %vm684_vm5, %v2169_v14  ;;  %v2171_v43 = vpack.c.bf16 %v752_v40, %v752_v40  ;;  %v744_v45 = vpop.permute.xlu0 %743  ;;  %v1073_v18 = vsel %vm479_vm0, %v1068_v12, 0.0 }
 0x280   : > { %v2168_v53 = vpack.c.bf16 %v674_v42, %v674_v42  ;;  %v749_v47 = vadd.f32 %v744_v45, %v737_v44  ;;  %1074 = vadd.xlane.f32.xlu1 %v1073_v18  ;;  %770 = vst.msk [vmem:[#allocation4 + $0x10] sm:$0xff] %vm767_vm7, %v2550_v37  ;;  %771 = vst.msk [vmem:[#allocation4 + $0x18] sm:$0xff] %vm767_vm7, %v2550_v37 }
 0x281   : > { %763 = vst.msk [vmem:[#allocation2 + $0x4] sm:$0xf] %vm761_vm6, %v2171_v43 }
 0x282   : > { %685 = vst.msk [vmem:[#allocation2] sm:$0xf] %vm684_vm5, %v2168_v53  ;;  %v751_v55 = vmul.f32 0.25, %v749_v47  ;;  %v1326_v61 = vpop.permute.xlu1 %1325  ;;  %v2551_v53 = vmov 0  }
 0x283   : > { %v1331_v0 = vsel %vm479_vm0, %v1326_v61, 0.0  ;;  %772 = vst.msk [vmem:[#allocation4 + $0x20] sm:$0xff] %vm767_vm7, %v2550_v37  ;;  %773 = vst.msk [vmem:[#allocation4 + $0x28] sm:$0xff] %vm767_vm7, %v2550_v37  ;;  %2366 = vset.pattern.permute.xlu1 %v2551_v53  ;;  %2365 = vset.pattern.permute.xlu0 %v2551_v53 }
 0x284   : > { %v2170_v56 = vpack.c.bf16 %v751_v55, %v751_v55  ;;  %774 = vst.msk [vmem:[#allocation4 + $0x30] sm:$0xff] %vm767_vm7, %v2550_v37  ;;  %775 = vst.msk [vmem:[#allocation4 + $0x38] sm:$0xff] %vm767_vm7, %v2550_v37 }
 0x286   : > { %762 = vst.msk [vmem:[#allocation2] sm:$0xf] %vm761_vm6, %v2170_v56  ;;  %v1584_v2 = vpop.permute.xlu1 %1583 }
 0x287   : > { %v1589_v6 = vsel %vm479_vm0, %v1584_v2, 0.0 }
 0x28d   : > { %v2367_v54 = vld [vmem:[#allocation2] sm:$0xff]  }
 0x296   : > { %v889_v57 = vpop.permute.xlu0 %888 }
 0x297   : > { %v894_v60 = vsel %vm479_vm0, %v889_v57, 0 }
 0x298   : > { %2208 = vmatpush3.bf16.xpose.msra.mxu0 %v894_v60 }
 0x299   : > { %2225 = vmatprep.subr.bf16.mxu0 %v2546_v32 }
 0x29a   : > { %v1070_v20 = vpop.permute.xlu0 %1069 }
 0x29b   : > { %v1076_v62 = vsel %vm479_vm0, %v1070_v20, 0.0 }
 0x29c   : > { %1077 = vadd.xlane.f32.xlu0 %v1076_v62 }
 0x29e   : > { %v1328_v1 = vpop.permute.xlu0 %1327 }
 0x29f   : > { %2210 = vmatmul.mubr.msk.bf16.vlgmr.msra.gmra.mxu0 %vm479_vm0, %v2367_v54  ;;  %v1334_v3 = vsel %vm479_vm0, %v1328_v1, 0.0 }
 0x2a0   : > { %1335 = vadd.xlane.f32.xlu1 %v1334_v3  ;;  %1332 = vadd.xlane.f32.xlu0 %v1331_v0 }
 0x2a1   : > { %2227 = vmatprep.mubr.msk.bf16.mxu0 %vm2547_vm2, %v2546_v32 }
 0x2a2   : > { %v1586_v7 = vpop.permute.xlu0 %1585 }
 0x2a3   : > { %v1592_v48 = vsel %vm479_vm0, %v1586_v7, 0.0 }
 0x2a4   : > { %1593 = vadd.xlane.f32.xlu1 %v1592_v48  ;;  %1590 = vadd.xlane.f32.xlu0 %v1589_v6 }
 0x309   : > { %v1075_v51 = vpop.xlane.xlu1 %1074 }
 0x30a   : > { %v1079_v59 = vmul.f32 0.0625, %v1075_v51 }
 0x30c   : > { %v1081_v8 = vadd.f32 1.1920929e-07, %v1079_v59 }
 0x30e   : > { %2395 = vrsqrt.f32 %v1081_v8 }
 0x31b   : > { %v2396_v10 = vpop.eup %2395 }
 0x31c   : > { %v2916_v13 = vmul.f32 %v2396_v10, %v2833_v15 }
 0x31e   : > { %1089 = vrot.lane.b32.xlu0 %v2916_v13, %s2548_s8 }
 0x325   : > { %v1078_v4 = vpop.xlane.xlu0 %1077 }
 0x326   : > { %v1080_v19 = vmul.f32 0.0625, %v1078_v4 }
 0x328   : > { %v1082_v11 = vadd.f32 1.1920929e-07, %v1080_v19 }
 0x329   : > { %v1336_v21 = vpop.xlane.xlu1 %1335  ;;  %v1333_v22 = vpop.xlane.xlu0 %1332 }
 0x32a   : > { %2397 = vrsqrt.f32 %v1082_v11  ;;  %v1338_v23 = vmul.f32 0.0625, %v1336_v21  ;;  %v1337_v17 = vmul.f32 0.0625, %v1333_v22  ;;  %v3030_v22 = vld [vmem:[#allocation4 + $0x8] sm:$0xff] }
 0x32c   : > { %v1340_v26 = vadd.f32 1.1920929e-07, %v1338_v23  ;;  %v1339_v46 = vadd.f32 1.1920929e-07, %v1337_v17 }
 0x32d   : > { %v1594_v52 = vpop.xlane.xlu1 %1593  ;;  %v1591_v58 = vpop.xlane.xlu0 %1590 }
 0x32e   : > { %2399 = vrsqrt.f32 %v1340_v26  ;;  %v1596_v63 = vmul.f32 0.0625, %v1594_v52  ;;  %v1595_v15 = vmul.f32 0.0625, %v1591_v58  ;;  %v2368_v52 = vld [vmem:[#allocation2] sm:$0xff]  }
 0x32f   : > { %2401 = vrsqrt.f32 %v1339_v46  ;;  %v2369_v58 = vld [vmem:[#allocation2] sm:$0xff]  }
 0x330   : > { %v1598_v9 = vadd.f32 1.1920929e-07, %v1596_v63  ;;  %v1597_v27 = vadd.f32 1.1920929e-07, %v1595_v15  ;;  %v2371_v63 = vld [vmem:[%s2649_s15 + $0x4] ss:$8 sps:$4 sm:$0xff]  }
 0x331   : > { %2214 = vmatpush3.bf16.msra.mxu1 %v2371_v63  ;;  %v2370_v15 = vld [vmem:[#allocation2] sm:$0xff]  }
 0x332   : > { %2403 = vrsqrt.f32 %v1598_v9  ;;  %2219 = vmatprep.subr.bf16.mxu1 %v2546_v32 }
 0x333   : > { %2405 = vrsqrt.f32 %v1597_v27 }
 0x337   : > { %v2398_v29 = vpop.eup %2397 }
 0x338   : > { %v2921_v31 = vmul.f32 %v2398_v29, %v2866_v41 }
 0x33a   : > { %1097 = vrot.lane.b32.xlu0 %v2921_v31, %s2537_s30  ;;  %1091 = vrot.lane.b32.xlu1 %v2921_v31, %s2548_s8 }
 0x33b   : > { %v2400_v33 = vpop.eup %2399 }
 0x33c   : > { %v2402_v34 = vpop.eup %2401  ;;  %v2928_v35 = vmul.f32 %v2400_v33, %v2871_v49 }
 0x33d   : > { %v2935_v41 = vmul.f32 %v2402_v34, %v2843_v24 }
 0x33e   : > { %1349 = vrot.lane.b32.xlu0 %v2928_v35, %s2549_s11  ;;  %1095 = vrot.lane.b32.xlu1 %v2916_v13, %s2537_s30 }
 0x33f   : > { %v2404_v36 = vpop.eup %2403 }
 0x340   : > { %v2942_v49 = vmul.f32 %v2404_v36, %v2876_v50  ;;  %v2406_v5 = vpop.eup %2405  ;;  %v796_v50 = vlaneseq }
 0x341   : > { %v2973_v24 = vmul.f32 %v2406_v5, %v2851_v28 }
 0x342   : > { %1355 = vrot.lane.b32.xlu0 %v2928_v35, %s2548_s8  ;;  %1347 = vrot.lane.b32.xlu1 %v2935_v41, %s2549_s11  ;;  %v2981_v14 = vshrl.u32 %v796_v50, 7  ;;  %v2986_v40 = vand.u32 127, %v796_v50 }
 0x344   : > { %v2984_v38 = vadd.s32 8, %v2981_v14  ;;  %vm806_vm9 = vcmp.le.s32.totalorder %v2986_v40, %v2981_v14 }
 0x346   : > { %1607 = vrot.lane.b32.xlu0 %v2942_v49, %s2542_s13  ;;  %1353 = vrot.lane.b32.xlu1 %v2935_v41, %s2548_s8  ;;  %vm807_vm8 = vcmp.le.s32.totalorder %v2986_v40, %v2984_v38 }
 0x34a   : > { %1613 = vrot.lane.b32.xlu0 %v2942_v49, %s2549_s11  ;;  %1605 = vrot.lane.b32.xlu1 %v2973_v24, %s2542_s13 }
 0x34e   : > { %1611 = vrot.lane.b32.xlu1 %v2973_v24, %s2549_s11 }
 0x35f   : > { %v930_v39 = vpop.f32.mrf.mxu0 }
 0x360   : > { %v3002_v45 = vsel %vm806_vm9, %v930_v39, -inf }
 0x361   : > { %v2211_v28 = vpop.f32.mrf.mxu0  ;;  %v941_v18 = vsel %vm479_vm0, %v3002_v45, -inf }
 0x363   : > { %v933_v42 = vpop.f32.mrf.mxu0 }
 0x364   : > { %v2993_v44 = vsel %vm807_vm8, %v933_v42, -inf }
 0x365   : > { %v2212_v12 = vpop.f32.mrf.mxu0  ;;  %v944_v43 = vsel %vm479_vm0, %v2993_v44, -inf }
 0x369   : > { %945 = vmax.xlane.f32.xlu0 %v944_v43 }
 0x372   : > { %942 = vmax.xlane.f32.xlu1 %v941_v18 }
 0x37f   : > { %2351 = vrot.lane.b32.xlu0 %v2769_v16, %s2536_s28 }
 0x383   : > { %2356 = vrot.lane.b32.xlu0 %v2769_v16, %s2535_s27 }
 0x390   : > { %v1090_v47 = vpop.permute.xlu0 %1089 }
 0x3ac   : > { %v1092_v55 = vpop.permute.xlu1 %1091  ;;  %v1098_v56 = vpop.permute.xlu0 %1097 }
 0x3ad   : > { %v1102_v62 = vsel %vm509_vm1, %v1092_v55, %v1098_v56 }
 0x3ae   : > { %v1112_v2 = vmul.f32 %v2781_v30, %v1102_v62 }
 0x3b0   : > { %v1096_v57 = vpop.permute.xlu1 %1095  ;;  %v1350_v60 = vpop.permute.xlu0 %1349 }
 0x3b1   : > { %v1101_v20 = vsel %vm509_vm1, %v1090_v47, %v1096_v57 }
 0x3b2   : > { %v1111_v61 = vmul.f32 %v2777_v25, %v1101_v20 }
 0x3b4   : > { %v1348_v54 = vpop.permute.xlu1 %1347  ;;  %1115 = vrot.lane.b32.xlu1 %v1111_v61, %s2536_s28  ;;  %v1356_v0 = vpop.permute.xlu0 %1355 }
 0x3b5   : > { %v1360_v1 = vsel %vm509_vm1, %v1350_v60, %v1356_v0 }
 0x3b6   : > { %v1370_v3 = vmul.f32 %v2781_v30, %v1360_v1 }
 0x3b8   : > { %v1354_v6 = vpop.permute.xlu1 %1353  ;;  %1117 = vrot.lane.b32.xlu1 %v1112_v2, %s2536_s28  ;;  %1375 = vrot.lane.b32.xlu0 %v1370_v3, %s2535_s27  ;;  %v1608_v7 = vpop.permute.xlu0 %1607 }
 0x3b9   : > { %v1359_v48 = vsel %vm509_vm1, %v1348_v54, %v1354_v6 }
 0x3ba   : > { %v1369_v51 = vmul.f32 %v2777_v25, %v1359_v48 }
 0x3bc   : > { %v1606_v59 = vpop.permute.xlu1 %1605  ;;  %1373 = vrot.lane.b32.xlu1 %v1369_v51, %s2535_s27  ;;  %v1614_v8 = vpop.permute.xlu0 %1613 }
 0x3bd   : > { %v1618_v10 = vsel %vm509_vm1, %v1608_v7, %v1614_v8 }
 0x3be   : > { %v1628_v19 = vmul.f32 %v2781_v30, %v1618_v10 }
 0x3c0   : > { %v1612_v4 = vpop.permute.xlu1 %1611  ;;  %2361 = vrot.lane.b32.xlu1 %v2769_v16, %s2534_s20 }
 0x3c1   : > { %v1617_v11 = vsel %vm509_vm1, %v1606_v59, %v1612_v4 }
 0x3c2   : > { %v1627_v21 = vmul.f32 %v2777_v25, %v1617_v11  ;;  %v3040_v25 = vld [vmem:[#allocation4] sm:$0xff] }
 0x3c4   : > { %1631 = vrot.lane.b32.xlu0 %v1627_v21, %s2534_s20  ;;  %1633 = vrot.lane.b32.xlu1 %v1628_v19, %s2534_s20 }
 0x3f2   : > { %v946_v23 = vpop.xlane.xlu0 %945 }
 0x3f3   : > { %v3033_v17 = vmax.f32 %v3030_v22, %v946_v23 }
 0x3f5   : > { %v950_v16 = vsub.f32 %v3030_v22, %v3033_v17  ;;  %988 = vst.msk [vmem:[#allocation4 + $0x8] sm:$0xff] %vm767_vm7, %v3033_v17  ;;  %962 = vperm.xlu1 %2366, %v3033_v17  }
 0x3f6   : > { %v2352_v9 = vpop.permute.xlu0 %2351 }
 0x3f7   : > { %v2354_v27 = vunpack.i.h.bf16 %v2352_v9  ;;  %v2353_v29 = vunpack.i.l.bf16 %v2352_v9 }
 0x3f9   : > { %v1109_v37 = vmul.f32 %v2353_v29, %v2916_v13  ;;  %v1110_v50 = vmul.f32 %v2354_v27, %v2921_v31 }
 0x3fa   : > { %v2357_v33 = vpop.permute.xlu0 %2356 }
 0x3fb   : > { %v943_v30 = vpop.xlane.xlu1 %942  ;;  %v2359_v36 = vunpack.i.h.bf16 %v2357_v33  ;;  %v2358_v5 = vunpack.i.l.bf16 %v2357_v33 }
 0x3fc   : > { %v3043_v26 = vmax.f32 %v3040_v25, %v943_v30 }
 0x3fd   : > { %v1368_v18 = vmul.f32 %v2359_v36, %v2928_v35  ;;  %v1367_v53 = vmul.f32 %v2358_v5, %v2935_v41 }
 0x3fe   : > { %v949_v46 = vsub.f32 %v3040_v25, %v3043_v26  ;;  %987 = vst.msk [vmem:[#allocation4] sm:$0xff] %vm767_vm7, %v3043_v26  ;;  %957 = vperm.xlu0 %2365, %v3043_v26  }
 0x402   : > { %1131 = vrot.lane.b32.xlu0 %v2368_v52, %s2534_s20 }
 0x406   : > { %1389 = vrot.lane.b32.xlu0 %v2369_v58, %s2535_s27 }
 0x40a   : > { %1647 = vrot.lane.b32.xlu0 %v2370_v15, %s2536_s28 }
 0x426   : > { %v1116_v34 = vpop.permute.xlu1 %1115 }
 0x427   : > { %v1121_v28 = vadd.f32 %v1116_v34, %v1109_v37 }
 0x42a   : > { %v1118_v39 = vpop.permute.xlu1 %1117  ;;  %v1376_v12 = vpop.permute.xlu0 %1375 }
 0x42b   : > { %v1122_v42 = vadd.f32 %v1118_v39, %v1110_v50  ;;  %v1380_v55 = vadd.f32 %v1376_v12, %v1368_v18 }
 0x42d   : > { %v1123_v43 = vpack.c.bf16 %v1122_v42, %v1121_v28 }
 0x42e   : > { %v1374_v47 = vpop.permute.xlu1 %1373 }
 0x42f   : > { %v1379_v56 = vadd.f32 %v1374_v47, %v1367_v53  ;;  %1134 = vrot.lane.b32.xlu1 %v1123_v43, %s2544_s18 }
 0x431   : > { %v1381_v57 = vpack.c.bf16 %v1380_v55, %v1379_v56 }
 0x432   : > { %v2362_v60 = vpop.permute.xlu1 %2361 }
 0x433   : > { %v2364_v20 = vunpack.i.h.bf16 %v2362_v60  ;;  %v2363_v13 = vunpack.i.l.bf16 %v2362_v60  ;;  %1392 = vrot.lane.b32.xlu1 %v1381_v57, %s2545_s12 }
 0x435   : > { %v1626_v31 = vmul.f32 %v2364_v20, %v2942_v49  ;;  %v1625_v61 = vmul.f32 %v2363_v13, %v2973_v24  ;;  %v1186_v13 = vld [vmem:[#allocation4 + $0x10] sm:$0xff] }
 0x436   : > { %v1634_v62 = vpop.permute.xlu1 %1633  ;;  %v1632_v54 = vpop.permute.xlu0 %1631 }
 0x437   : > { %v1638_v35 = vadd.f32 %v1634_v62, %v1626_v31  ;;  %v1637_v0 = vadd.f32 %v1632_v54, %v1625_v61  ;;  %v1187_v61 = vld [vmem:[#allocation4 + $0x18] sm:$0xff] }
 0x439   : > { %v1639_v41 = vpack.c.bf16 %v1638_v35, %v1637_v0  ;;  %v1444_v35 = vld [vmem:[#allocation4 + $0x20] sm:$0xff]  ;;  %v1445_v0 = vld [vmem:[#allocation4 + $0x28] sm:$0xff] }
 0x43b   : > { %1650 = vrot.lane.b32.xlu1 %v1639_v41, %s2543_s17  ;;  %v2372_v41 = vld [vmem:[%s2649_s15 + $0x4] ss:$8 sps:$4 sm:$0xff]  }
 0x470   : > { %v963_v1 = vpop.permute.xlu1 %962 }
 0x471   : > { %v966_v2 = vsub.f32 %v2993_v44, %v963_v1 }
 0x473   : > { %v969_v3 = vmul.f32 1.442695, %v966_v2 }
 0x475   : > { %2407 = vpow2.f32 %v969_v3  ;;  %v3137_v3 = vld [vmem:[#allocation4 + $0x30] sm:$0xff] }
 0x479   : > { %v958_v6 = vpop.permute.xlu0 %957 }
 0x47a   : > { %v965_v7 = vsub.f32 %v3002_v45, %v958_v6 }
 0x47c   : > { %v967_v48 = vmul.f32 1.442695, %v965_v7 }
 0x47d   : > { %v1132_v8 = vpop.permute.xlu0 %1131 }
 0x47e   : > { %2409 = vpow2.f32 %v967_v48  ;;  %v3144_v48 = vld [vmem:[#allocation4 + $0x38] sm:$0xff] }
 0x481   : > { %v1390_v19 = vpop.permute.xlu0 %1389 }
 0x482   : > { %v3066_v49 = vpop.eup %2407 }
 0x485   : > { %v1648_v21 = vpop.permute.xlu0 %1647 }
 0x48b   : > { %v3068_v24 = vpop.eup %2409 }
 0x48c   : > { %v971_v51 = vpack.c.bf16 %v3066_v49, %v3068_v24 }
 0x48e   : > { %2216 = vmatmul.mubr.msk.bf16.vlgmr.msra.gmra.mxu1 %vm479_vm0, %v971_v51 }
 0x48f   : > { %2221 = vmatprep.mubr.msk.bf16.mxu1 %vm2547_vm2, %v2546_v32 }
 0x4a1   : > { %v1135_v44 = vpop.permute.xlu1 %1134 }
 0x4a2   : > { %v1140_v59 = vsel %vm479_vm0, %v1135_v44, 0  ;;  %v2373_v44 = vld [vmem:[%s2649_s15 + $0x4] ss:$8 sps:$4 sm:$0xff]  }
 0x4a3   : > { %2220 = vmatpush3.bf16.xpose.msra.mxu1 %v1140_v59 }
 0x4a4   : > { %2231 = vmatprep.subr.bf16.mxu1 %v2546_v32 }
 0x4a5   : > { %v1393_v45 = vpop.permute.xlu1 %1392 }
 0x4a6   : > { %v1398_v10 = vsel %vm479_vm0, %v1393_v45, 0 }
 0x4aa   : > { %2222 = vmatmul.mubr.msk.bf16.vlgmr.msra.gmra.mxu1 %vm479_vm0, %v1132_v8 }
 0x4ab   : > { %2232 = vmatpush3.bf16.xpose.msra.mxu1 %v1398_v10  ;;  %2233 = vmatprep.mubr.msk.bf16.mxu1 %vm2547_vm2, %v2546_v32  ;;  %v2374_v10 = vld [vmem:[%s2649_s15 + $0x4] ss:$8 sps:$4 sm:$0xff]   ;;  %s398_s15 = sand.u32 1, %s2515_s22  }
 0x4ac   : > { %2243 = vmatprep.subr.bf16.mxu1 %v2546_v32 }
 0x4ad   : > { %v1651_v4 = vpop.permute.xlu1 %1650 }
 0x4ae   : > { %v1656_v11 = vsel %vm479_vm0, %v1651_v4, 0  ;;  %v976_v4 = vsel %vm479_vm0, %v3068_v24, 0.0 }
 0x4b2   : > { %2234 = vmatmul.mubr.msk.bf16.vlgmr.msra.gmra.mxu1 %vm479_vm0, %v1390_v19  ;;  %v951_v19 = vmul.f32 1.442695, %v949_v46 }
 0x4b3   : > { %2244 = vmatpush3.bf16.xpose.msra.mxu1 %v1656_v11  ;;  %2245 = vmatprep.mubr.msk.bf16.mxu1 %vm2547_vm2, %v2546_v32 }
 0x4b4   : > { %2411 = vpow2.f32 %v951_v19  ;;  %v973_v19 = vld [vmem:[#allocation5 + $0x8] sm:$0xff] }
 0x4ba   : > { %2246 = vmatmul.mubr.msk.bf16.vlgmr.msra.gmra.mxu1 %vm479_vm0, %v1648_v21  ;;  %v953_v21 = vmul.f32 1.442695, %v950_v16 }
 0x4bc   : > { %2413 = vpow2.f32 %v953_v21 }
 0x4c1   : > { %v3175_v17 = vpop.eup %2411 }
 0x4c9   : > { %v3178_v16 = vpop.eup %2413 }
 0x54e   : > { %v3087_v23 = vpop.f32.mrf.mxu1 }
 0x550   : > { %v2217_v30 = vpop.f32.mrf.mxu1 }
 0x552   : > { %v3089_v52 = vpop.f32.mrf.mxu1 }
 0x554   : > { %v2218_v58 = vpop.f32.mrf.mxu1 }
 0x56a   : > { %v1176_v63 = vpop.f32.mrf.mxu1 }
 0x56b   : > { %v3094_v15 = vsel %vm806_vm9, %v1176_v63, -inf }
 0x56c   : > { %v2223_v9 = vpop.f32.mrf.mxu1  ;;  %v1188_v27 = vsel %vm479_vm0, %v3094_v15, -inf }
 0x56d   : > { %1189 = vmax.xlane.f32.xlu1 %v1188_v27  ;;  %v979_v9 = vsel %vm479_vm0, %v3066_v49, 0.0 }
 0x56e   : > { %v1179_v29 = vpop.f32.mrf.mxu1 }
 0x56f   : > { %v3101_v33 = vsel %vm807_vm8, %v1179_v29, -inf }
 0x570   : > { %v2224_v34 = vpop.f32.mrf.mxu1  ;;  %v1191_v36 = vsel %vm479_vm0, %v3101_v33, -inf }
 0x571   : > { %1192 = vmax.xlane.f32.xlu0 %v1191_v36 }
 0x572   : > { %v1434_v5 = vpop.f32.mrf.mxu1 }
 0x573   : > { %v3108_v37 = vsel %vm806_vm9, %v1434_v5, -inf }
 0x574   : > { %v2235_v50 = vpop.f32.mrf.mxu1  ;;  %v1446_v39 = vsel %vm479_vm0, %v3108_v37, -inf }
 0x575   : > { %1447 = vmax.xlane.f32.xlu0 %v1446_v39 }
 0x576   : > { %v1437_v28 = vpop.f32.mrf.mxu1 }
 0x577   : > { %v3115_v42 = vsel %vm807_vm8, %v1437_v28, -inf }
 0x578   : > { %v2236_v12 = vpop.f32.mrf.mxu1  ;;  %v1449_v43 = vsel %vm479_vm0, %v3115_v42, -inf }
 0x579   : > { %1450 = vmax.xlane.f32.xlu1 %v1449_v43 }
 0x57a   : > { %v1692_v18 = vpop.f32.mrf.mxu1 }
 0x57b   : > { %v3122_v53 = vsel %vm806_vm9, %v1692_v18, -inf }
 0x57c   : > { %v1704_v47 = vsel %vm479_vm0, %v3122_v53, -inf  ;;  %v2247_v55 = vpop.f32.mrf.mxu1 }
 0x57d   : > { %1705 = vmax.xlane.f32.xlu0 %v1704_v47 }
 0x57e   : > { %v1695_v56 = vpop.f32.mrf.mxu1 }
 0x57f   : > { %v3129_v57 = vsel %vm807_vm8, %v1695_v56, -inf }
 0x580   : > { %v1707_v60 = vsel %vm479_vm0, %v3129_v57, -inf  ;;  %v2248_v20 = vpop.f32.mrf.mxu1 }
 0x581   : > { %1708 = vmax.xlane.f32.xlu1 %v1707_v60 }
 0x5f6   : > { %v1190_v14 = vpop.xlane.xlu1 %1189 }
 0x5f7   : > { %v1194_v31 = vmax.f32 %v1186_v13, %v1190_v14 }
 0x5f9   : > { %1234 = vst.msk [vmem:[#allocation4 + $0x10] sm:$0xff] %vm767_vm7, %v1194_v31  ;;  %1204 = vperm.xlu0 %2365, %v1194_v31   ;;  %v1196_v11 = vsub.f32 %v1186_v13, %v1194_v31 }
 0x5fa   : > { %v1193_v62 = vpop.xlane.xlu0 %1192 }
 0x5fb   : > { %v1195_v54 = vmax.f32 %v1187_v61, %v1193_v62  ;;  %v1198_v58 = vmul.f32 1.442695, %v1196_v11  ;;  %v1039_v11 = vld [vmem:[#allocation3] sm:$0xff] }
 0x5fd   : > { %1235 = vst.msk [vmem:[#allocation4 + $0x18] sm:$0xff] %vm767_vm7, %v1195_v54  ;;  %1209 = vperm.xlu1 %2366, %v1195_v54   ;;  %v1197_v30 = vsub.f32 %v1187_v61, %v1195_v54  ;;  %2415 = vpow2.f32 %v1198_v58 }
 0x5fe   : > { %v1448_v38 = vpop.xlane.xlu0 %1447 }
 0x5ff   : > { %v1452_v40 = vmax.f32 %v1444_v35, %v1448_v38  ;;  %v1200_v24 = vmul.f32 1.442695, %v1197_v30 }
 0x601   : > { %1492 = vst.msk [vmem:[#allocation4 + $0x20] sm:$0xff] %vm767_vm7, %v1452_v40  ;;  %1462 = vperm.xlu1 %2366, %v1452_v40   ;;  %v1454_v63 = vsub.f32 %v1444_v35, %v1452_v40  ;;  %2417 = vpow2.f32 %v1200_v24  ;;  %v1040_v24 = vld [vmem:[#allocation3 + $0x8] sm:$0xff] }
 0x602   : > { %v1451_v1 = vpop.xlane.xlu1 %1450 }
 0x603   : > { %v1453_v2 = vmax.f32 %v1445_v0, %v1451_v1  ;;  %v1456_v27 = vmul.f32 1.442695, %v1454_v63 }
 0x605   : > { %1493 = vst.msk [vmem:[#allocation4 + $0x28] sm:$0xff] %vm767_vm7, %v1453_v2  ;;  %1467 = vperm.xlu0 %2365, %v1453_v2   ;;  %1241 = vrot.lane.b32.xlu1 %v2372_v41, %s2534_s20  ;;  %v1455_v25 = vsub.f32 %v1445_v0, %v1453_v2  ;;  %2419 = vpow2.f32 %v1456_v27  ;;  %s2126_s20 = sshll.u32 %s398_s15, 3 }
 0x606   : > { %v1706_v6 = vpop.xlane.xlu0 %1705 }
 0x607   : > { %v3142_v7 = vmax.f32 %v3137_v3, %v1706_v6  ;;  %v1458_v22 = vmul.f32 1.442695, %v1455_v25 }
 0x609   : > { %v1712_v51 = vsub.f32 %v3137_v3, %v3142_v7  ;;  %1750 = vst.msk [vmem:[#allocation4 + $0x30] sm:$0xff] %vm767_vm7, %v3142_v7  ;;  %1720 = vperm.xlu0 %2365, %v3142_v7   ;;  %2421 = vpow2.f32 %v1458_v22 }
 0x60a   : > { %v1709_v59 = vpop.xlane.xlu1 %1708  ;;  %v3180_v26 = vpop.eup %2415 }
 0x60b   : > { %v3153_v45 = vmax.f32 %v3144_v48, %v1709_v59 }
 0x60d   : > { %v1713_v8 = vsub.f32 %v3144_v48, %v3153_v45  ;;  %1751 = vst.msk [vmem:[#allocation4 + $0x38] sm:$0xff] %vm767_vm7, %v3153_v45  ;;  %1499 = vrot.lane.b32.xlu0 %v2373_v44, %s2535_s27  ;;  %1725 = vperm.xlu1 %2366, %v3153_v45   ;;  %v972_v44 = vld [vmem:[#allocation5] sm:$0xff]  ;;  %s400_s27 = scalar_lea.vmem [#allocation6], %s2126_s20 }
 0x60e   : > { %v3184_v46 = vpop.eup %2417  ;;  %v974_v59 = vmul.f32 %v3175_v17, %v972_v44  ;;  %s1951_s30 = sshll.u32 %s400_s27, 4  ;;  %s3285_s30 = int_to_ptr.vmem [resolvable:$true] %s1951_s30 }
 0x611   : > { %1757 = vrot.lane.b32.xlu1 %v2374_v10, %s2536_s28  ;;  %s2174_s28 = sshll.u32 %s2523_s24, 7  ;;  %s2552_s24 = smov [#allocation6]  }
 0x612   : > { %v3186_v49 = vpop.eup %2419  ;;  %s3283_s16 = scalar_lea.hbm %s3340_s6, %s2174_s28 }
 0x616   : > { %v3190_v29 = vpop.eup %2421 }
 0x62c   : > { %977 = vadd.xlane.f32.xlu0 %v976_v4 }
 0x635   : > { %980 = vadd.xlane.f32.xlu1 %v979_v9 }
 0x642   : > { %1043 = vperm.xlu0 %2365, %v3175_v17  }
 0x646   : > { %1292 = vperm.xlu0 %2365, %v3180_v26   ;;  %1048 = vperm.xlu1 %2366, %v3178_v16  }
 0x64a   : > { %1550 = vperm.xlu0 %2365, %v3186_v49   ;;  %1297 = vperm.xlu1 %2366, %v3184_v46  }
 0x64e   : > { %1555 = vperm.xlu1 %2366, %v3190_v29  }
 0x674   : > { %v1205_v34 = vpop.permute.xlu0 %1204 }
 0x675   : > { %v1212_v36 = vsub.f32 %v3094_v15, %v1205_v34 }
 0x677   : > { %v1214_v5 = vmul.f32 1.442695, %v1212_v36  ;;  %v1220_v36 = vld [vmem:[#allocation5 + $0x10] sm:$0xff] }
 0x678   : > { %v1210_v50 = vpop.permute.xlu1 %1209 }
 0x679   : > { %2423 = vpow2.f32 %v1214_v5  ;;  %v1213_v39 = vsub.f32 %v3101_v33, %v1210_v50 }
 0x67b   : > { %v1216_v28 = vmul.f32 1.442695, %v1213_v39  ;;  %v1221_v39 = vld [vmem:[#allocation5 + $0x18] sm:$0xff] }
 0x67c   : > { %v1463_v12 = vpop.permute.xlu1 %1462 }
 0x67d   : > { %2425 = vpow2.f32 %v1216_v28  ;;  %v1470_v43 = vsub.f32 %v3108_v37, %v1463_v12 }
 0x67f   : > { %v1472_v18 = vmul.f32 1.442695, %v1470_v43  ;;  %v1478_v43 = vld [vmem:[#allocation5 + $0x20] sm:$0xff] }
 0x680   : > { %v1468_v47 = vpop.permute.xlu0 %1467  ;;  %v1242_v55 = vpop.permute.xlu1 %1241 }
 0x681   : > { %2427 = vpow2.f32 %v1472_v18  ;;  %v1471_v56 = vsub.f32 %v3115_v42, %v1468_v47  ;;  %2226 = vmatpush3.bf16.msra.mxu0 %v1242_v55  ;;  %v1480_v47 = vmul.f32 %v3186_v49, %v1478_v43 }
 0x682   : > { %2237 = vmatprep.subr.bf16.mxu0 %v2546_v32 }
 0x683   : > { %v1474_v15 = vmul.f32 1.442695, %v1471_v56  ;;  %v1479_v56 = vld [vmem:[#allocation5 + $0x28] sm:$0xff] }
 0x684   : > { %v1721_v60 = vpop.permute.xlu0 %1720 }
 0x685   : > { %2429 = vpow2.f32 %v1474_v15  ;;  %v1728_v20 = vsub.f32 %v3122_v53, %v1721_v60 }
 0x686   : > { %v2424_v33 = vpop.eup %2423 }
 0x687   : > { %v1224_v13 = vsel %vm479_vm0, %v2424_v33, 0.0  ;;  %v1730_v14 = vmul.f32 1.442695, %v1728_v20 }
 0x688   : > { %1225 = vadd.xlane.f32.xlu0 %v1224_v13  ;;  %v1726_v37 = vpop.permute.xlu1 %1725  ;;  %v1500_v54 = vpop.permute.xlu0 %1499 }
 0x689   : > { %v1729_v31 = vsub.f32 %v3129_v57, %v1726_v37  ;;  %2431 = vpow2.f32 %v1730_v14 }
 0x68a   : > { %v2426_v61 = vpop.eup %2425 }
 0x68b   : > { %v1732_v62 = vmul.f32 1.442695, %v1729_v31  ;;  %v1227_v42 = vsel %vm479_vm0, %v2426_v61, 0.0  ;;  %v1218_v35 = vpack.c.bf16 %v2426_v61, %v2424_v33 }
 0x68c   : > { %1228 = vadd.xlane.f32.xlu1 %v1227_v42  ;;  %v1758_v41 = vpop.permute.xlu1 %1757 }
 0x68d   : > { %2433 = vpow2.f32 %v1732_v62  ;;  %2228 = vmatmul.mubr.msk.bf16.vlgmr.msra.gmra.mxu0 %vm479_vm0, %v1218_v35 }
 0x68e   : > { %v2428_v53 = vpop.eup %2427  ;;  %2238 = vmatpush3.bf16.msra.mxu0 %v1500_v54  ;;  %2239 = vmatprep.mubr.msk.bf16.mxu0 %vm2547_vm2, %v2546_v32 }
 0x68f   : > { %v1482_v38 = vsel %vm479_vm0, %v2428_v53, 0.0  ;;  %2249 = vmatprep.subr.bf16.mxu0 %v2546_v32 }
 0x690   : > { %1483 = vadd.xlane.f32.xlu0 %v1482_v38  ;;  %v1716_v38 = vmul.f32 1.442695, %v1713_v8 }
 0x692   : > { %v2430_v57 = vpop.eup %2429 }
 0x693   : > { %v1485_v40 = vsel %vm479_vm0, %v2430_v57, 0.0  ;;  %v1476_v0 = vpack.c.bf16 %v2430_v57, %v2428_v53  ;;  %v1714_v53 = vmul.f32 1.442695, %v1712_v51 }
 0x694   : > { %1486 = vadd.xlane.f32.xlu1 %v1485_v40 }
 0x695   : > { %2240 = vmatmul.mubr.msk.bf16.vlgmr.msra.gmra.mxu0 %vm479_vm0, %v1476_v0  ;;  %2435 = vpow2.f32 %v1714_v53 }
 0x696   : > { %2250 = vmatpush3.bf16.msra.mxu0 %v1758_v41  ;;  %2251 = vmatprep.mubr.msk.bf16.mxu0 %vm2547_vm2, %v2546_v32  ;;  %v3211_v1 = vpop.eup %2431  ;;  %v975_v32 = vmul.f32 %v3178_v16, %v973_v19  ;;  %2437 = vpow2.f32 %v1716_v38 }
 0x697   : > { %v1740_v35 = vsel %vm479_vm0, %v3211_v1, 0.0 }
 0x69a   : > { %v3213_v2 = vpop.eup %2433 }
 0x69b   : > { %v1734_v6 = vpack.c.bf16 %v3213_v2, %v3211_v1  ;;  %v1743_v57 = vsel %vm479_vm0, %v3213_v2, 0.0 }
 0x69d   : > { %2252 = vmatmul.mubr.msk.bf16.vlgmr.msra.gmra.mxu0 %vm479_vm0, %v1734_v6 }
 0x6a2   : > { %v2436_v6 = vpop.eup %2435 }
 0x6a3   : > { %v2438_v7 = vpop.eup %2437 }
 0x6b5   : > { %v978_v10 = vpop.xlane.xlu0 %977 }
 0x6b6   : > { %v982_v4 = vadd.f32 %v978_v10, %v974_v59 }
 0x6b8   : > { %985 = vst.msk [vmem:[#allocation5] sm:$0xff] %vm767_vm7, %v982_v4 }
 0x6bd   : > { %v1044_v21 = vpop.permute.xlu0 %1043 }
 0x6be   : > { %v1051_v30 = vmul.f32 %v1044_v21, %v1039_v11  ;;  %v981_v58 = vpop.xlane.xlu1 %980 }
 0x6bf   : > { %v983_v63 = vadd.f32 %v981_v58, %v975_v32  ;;  %v1835_v40 = vld [vmem:[#allocation5] sm:$0xff] }
 0x6c0   : > { %v1053_v9 = vadd.f32 %v1051_v30, %v3087_v23  ;;  %v1222_v23 = vmul.f32 %v3180_v26, %v1220_v36  ;;  %v1481_v26 = vmul.f32 %v3190_v29, %v1479_v56  ;;  %2439 = vrcp.f32 %v1835_v40 }
 0x6c1   : > { %986 = vst.msk [vmem:[#allocation5 + $0x8] sm:$0xff] %vm767_vm7, %v983_v63  ;;  %v3226_v17 = vpop.permute.xlu0 %1292 }
 0x6c2   : > { %1055 = vst.msk [vmem:[#allocation3] sm:$0xff] %vm479_vm0, %v1053_v9  ;;  %v1049_v27 = vpop.permute.xlu1 %1048 }
 0x6c3   : > { %v1052_v25 = vmul.f32 %v1049_v27, %v1040_v24 }
 0x6c5   : > { %v1054_v22 = vadd.f32 %v1052_v25, %v3089_v52  ;;  %v3230_v16 = vpop.permute.xlu0 %1550  ;;  %v1223_v52 = vmul.f32 %v3184_v46, %v1221_v39 }
 0x6c6   : > { %v3228_v34 = vpop.permute.xlu1 %1297 }
 0x6c7   : > { %1056 = vst.msk [vmem:[#allocation3 + $0x8] sm:$0xff] %vm479_vm0, %v1054_v22 }
 0x6c8   : > { %v1836_v0 = vld [vmem:[#allocation5 + $0x8] sm:$0xff] }
 0x6c9   : > { %2441 = vrcp.f32 %v1836_v0  ;;  %v1288_v10 = vld [vmem:[#allocation3] sm:$0xff] }
 0x6ca   : > { %v3233_v5 = vpop.permute.xlu1 %1555  ;;  %v1300_v4 = vmul.f32 %v3226_v17, %v1288_v10 }
 0x6cd   : > { %v2440_v51 = vpop.eup %2439 }
 0x6ce   : > { %v1289_v19 = vld [vmem:[#allocation3 + $0x8] sm:$0xff] }
 0x6cf   : > { %v1301_v32 = vmul.f32 %v3228_v34, %v1289_v19  ;;  %v1736_v34 = vld [vmem:[#allocation5 + $0x30] sm:$0xff] }
 0x6d6   : > { %v2442_v45 = vpop.eup %2441 }
 0x711   : > { %v1226_v50 = vpop.xlane.xlu0 %1225 }
 0x712   : > { %v1230_v28 = vadd.f32 %v1226_v50, %v1222_v23  ;;  %v1738_v23 = vmul.f32 %v2436_v6, %v1736_v34 }
 0x714   : > { %1232 = vst.msk [vmem:[#allocation5 + $0x10] sm:$0xff] %vm767_vm7, %v1230_v28  ;;  %v1737_v28 = vld [vmem:[#allocation5 + $0x38] sm:$0xff] }
 0x715   : > { %v1229_v12 = vpop.xlane.xlu1 %1228 }
 0x716   : > { %v1231_v18 = vadd.f32 %v1229_v12, %v1223_v52  ;;  %v1739_v52 = vmul.f32 %v2438_v7, %v1737_v28 }
 0x718   : > { %1233 = vst.msk [vmem:[#allocation5 + $0x18] sm:$0xff] %vm767_vm7, %v1231_v18 }
 0x719   : > { %v1484_v55 = vpop.xlane.xlu0 %1483 }
 0x71a   : > { %v1488_v15 = vadd.f32 %v1484_v55, %v1480_v47 }
 0x71b   : > { %v1857_v41 = vld [vmem:[#allocation5 + $0x10] sm:$0xff] }
 0x71c   : > { %1490 = vst.msk [vmem:[#allocation5 + $0x20] sm:$0xff] %vm767_vm7, %v1488_v15  ;;  %2443 = vrcp.f32 %v1857_v41 }
 0x71d   : > { %v1487_v60 = vpop.xlane.xlu1 %1486 }
 0x71e   : > { %v1489_v20 = vadd.f32 %v1487_v60, %v1481_v26 }
 0x71f   : > { %v1858_v1 = vld [vmem:[#allocation5 + $0x18] sm:$0xff] }
 0x720   : > { %1491 = vst.msk [vmem:[#allocation5 + $0x28] sm:$0xff] %vm767_vm7, %v1489_v20  ;;  %2445 = vrcp.f32 %v1858_v1 }
 0x723   : > { %v1879_v3 = vld [vmem:[#allocation5 + $0x20] sm:$0xff] }
 0x724   : > { %2447 = vrcp.f32 %v1879_v3 }
 0x727   : > { %v1880_v48 = vld [vmem:[#allocation5 + $0x28] sm:$0xff] }
 0x728   : > { %2449 = vrcp.f32 %v1880_v48 }
 0x729   : > { %v2444_v8 = vpop.eup %2443 }
 0x72d   : > { %v2446_v2 = vpop.eup %2445 }
 0x731   : > { %v2448_v44 = vpop.eup %2447 }
 0x735   : > { %v2450_v59 = vpop.eup %2449 }
 0x74d   : > { %v1281_v33 = vpop.f32.mrf.mxu0 }
 0x74e   : > { %1304 = vrot.lane.b32.xlu0 %v1281_v33, %s2543_s17 }
 0x74f   : > { %v2229_v46 = vpop.f32.mrf.mxu0 }
 0x751   : > { %v1284_v13 = vpop.f32.mrf.mxu0 }
 0x752   : > { %1306 = vrot.lane.b32.xlu1 %v1284_v13, %s2543_s17  ;;  %s3287_s17 = scalar_lea.sflag [#allocation7], %s398_s15 }
 0x753   : > { %v2230_v14 = vpop.f32.mrf.mxu0 }
 0x755   : > { %v1539_v49 = vpop.f32.mrf.mxu0 }
 0x756   : > { %1562 = vrot.lane.b32.xlu0 %v1539_v49, %s2545_s12 }
 0x757   : > { %v2241_v37 = vpop.f32.mrf.mxu0 }
 0x759   : > { %v1542_v31 = vpop.f32.mrf.mxu0 }
 0x75a   : > { %1564 = vrot.lane.b32.xlu1 %v1542_v31, %s2545_s12  ;;  %s2459_s12 = sshll.u32 %s2552_s24, 4  ;;  %s2460_s12 = int_to_ptr.vmem [resolvable:$false] %s2459_s12 }
 0x75b   : > { %v2242_v29 = vpop.f32.mrf.mxu0  ;;  %s2461_s8 = scalar_lea.vmem %s2460_s12, 256  ;;  %p2462_p1 = scmp.lt.s32.totalorder %s3285_s30, %s2460_s12 }
 0x75d   : > { %v1797_v61 = vpop.f32.mrf.mxu0 }
 0x75f   : > { %v2253_v62 = vpop.f32.mrf.mxu0 }
 0x761   : > { %v1800_v42 = vpop.f32.mrf.mxu0 }
 0x763   : > { %v2254_v54 = vpop.f32.mrf.mxu0 }
 0x775   : > { %1741 = vadd.xlane.f32.xlu0 %v1740_v35 }
 0x77e   : > { %1744 = vadd.xlane.f32.xlu1 %v1743_v57 }
 0x78b   : > { %1808 = vperm.xlu0 %2365, %v2436_v6  }
 0x78f   : > { %1813 = vperm.xlu1 %2366, %v2438_v7   ;;  %1820 = vrot.lane.b32.xlu0 %v1797_v61, %s2544_s18 }
 0x793   : > { %1843 = vperm.xlu0 %2365, %v2440_v51   ;;  %1822 = vrot.lane.b32.xlu1 %v1800_v42, %s2544_s18  ;;  %s2455_s18 = scalar_lea.vmem %s3285_s30, 128 }
 0x794   : > { %p2456_p12 = scmp.ne.s32.totalorder %s3285_s30, %s2455_s18  ;;  %p2463_p2 = scmp.lt.s32.totalorder %s2461_s8, %s2455_s18 }
 0x796   : > { %p2457_p13 = pnand %p2456_p12, %p2629_p4  ;;  %p2464_p3 = por %p2463_p2, %p2462_p1 }
 0x797   : > { %1865 = vperm.xlu0 %2365, %v2444_v8   ;;  %1848 = vperm.xlu1 %2366, %v2442_v45  }
 0x798   : > { %p2458_p0 = pneg %p2457_p13 }
 0x79a   : > { %p2465_p5 = pnand %p2464_p3, %p2458_p0 }
 0x79b   : > { %1887 = vperm.xlu0 %2365, %v2448_v44   ;;  %1870 = vperm.xlu1 %2366, %v2446_v2  }
 0x79f   : > { %1892 = vperm.xlu1 %2366, %v2450_v59  }
 0x7c0   : > { %v1305_v11 = vpop.permute.xlu0 %1304 }
 0x7c1   : > { %v1310_v21 = vadd.f32 %v1305_v11, %v1300_v4 }
 0x7c3   : > { %1313 = vst.msk [vmem:[#allocation3] sm:$0xff] %vm1312_vm11, %v1310_v21 }
 0x7c4   : > { %v1307_v30 = vpop.permute.xlu1 %1306 }
 0x7c5   : > { %v1311_v58 = vadd.f32 %v1307_v30, %v1301_v32 }
 0x7c7   : > { %1314 = vst.msk [vmem:[#allocation3 + $0x8] sm:$0xff] %vm1312_vm11, %v1311_v58 }
 0x7c8   : > { %v1563_v24 = vpop.permute.xlu0 %1562 }
 0x7ca   : > { %v1546_v63 = vld [vmem:[#allocation3] sm:$0xff] }
 0x7cb   : > { %v1558_v9 = vmul.f32 %v3230_v16, %v1546_v63 }
 0x7cc   : > { %v1565_v17 = vpop.permute.xlu1 %1564 }
 0x7cd   : > { %v1568_v27 = vadd.f32 %v1563_v24, %v1558_v9 }
 0x7ce   : > { %v1547_v25 = vld [vmem:[#allocation3 + $0x8] sm:$0xff] }
 0x7cf   : > { %1571 = vst.msk [vmem:[#allocation3] sm:$0xff] %vm1570_vm12, %v1568_v27  ;;  %v1559_v22 = vmul.f32 %v3233_v5, %v1547_v25 }
 0x7d1   : > { %v1569_v36 = vadd.f32 %v1565_v17, %v1559_v22 }
 0x7d3   : > { %1572 = vst.msk [vmem:[#allocation3 + $0x8] sm:$0xff] %vm1570_vm12, %v1569_v36 }
 0x7d6   : > { %v1804_v18 = vld [vmem:[#allocation3] sm:$0xff] }
 0x7da   : > { %v1805_v26 = vld [vmem:[#allocation3 + $0x8] sm:$0xff] }
 0x7fe   : > { %v1742_v50 = vpop.xlane.xlu0 %1741 }
 0x7ff   : > { %v1746_v39 = vadd.f32 %v1742_v50, %v1738_v23 }
 0x801   : > { %1748 = vst.msk [vmem:[#allocation5 + $0x30] sm:$0xff] %vm767_vm7, %v1746_v39 }
 0x806   : > { %v1809_v16 = vpop.permute.xlu0 %1808 }
 0x807   : > { %v1745_v12 = vpop.xlane.xlu1 %1744  ;;  %v1816_v55 = vmul.f32 %v1809_v16, %v1804_v18 }
 0x808   : > { %v1901_v43 = vld [vmem:[#allocation5 + $0x30] sm:$0xff]  ;;  %v1747_v47 = vadd.f32 %v1745_v12, %v1739_v52 }
 0x809   : > { %2451 = vrcp.f32 %v1901_v43 }
 0x80a   : > { %1749 = vst.msk [vmem:[#allocation5 + $0x38] sm:$0xff] %vm767_vm7, %v1747_v47  ;;  %v1821_v5 = vpop.permute.xlu0 %1820 }
 0x80b   : > { %v1826_v56 = vadd.f32 %v1821_v5, %v1816_v55  ;;  %v1814_v15 = vpop.permute.xlu1 %1813 }
 0x80c   : > { %v1817_v60 = vmul.f32 %v1814_v15, %v1805_v26 }
 0x80d   : > { %1829 = vst.msk [vmem:[#allocation3] sm:$0xff] %vm1828_vm13, %v1826_v56 }
 0x80e   : > { %v1844_v14 = vpop.permute.xlu0 %1843 }
 0x80f   : > { %v1823_v20 = vpop.permute.xlu1 %1822 }
 0x810   : > { %v1827_v33 = vadd.f32 %v1823_v20, %v1817_v60 }
 0x811   : > { %v1902_v46 = vld [vmem:[#allocation5 + $0x38] sm:$0xff] }
 0x812   : > { %2453 = vrcp.f32 %v1902_v46  ;;  %1830 = vst.msk [vmem:[#allocation3 + $0x8] sm:$0xff] %vm1828_vm13, %v1827_v33  ;;  %v1866_v42 = vpop.permute.xlu0 %1865 }
 0x813   : > { %v1849_v29 = vpop.permute.xlu1 %1848 }
 0x814   : > { %v1839_v13 = vld [vmem:[#allocation3] sm:$0xff] }
 0x815   : > { %v1851_v49 = vmul.f32 %v1844_v14, %v1839_v13 }
 0x816   : > { %v2452_v37 = vpop.eup %2451  ;;  %v1888_v0 = vpop.permute.xlu0 %1887 }
 0x817   : > { %1854 = vst.msk [vmem:[#allocation3] sm:$0xff] %vm479_vm0, %v1851_v49  ;;  %1909 = vperm.xlu0 %2365, %v2452_v37   ;;  %v1871_v38 = vpop.permute.xlu1 %1870 }
 0x819   : > { %v1840_v31 = vld [vmem:[#allocation3 + $0x8] sm:$0xff] }
 0x81a   : > { %v1852_v61 = vmul.f32 %v1849_v29, %v1840_v31 }
 0x81b   : > { %v1893_v6 = vpop.permute.xlu1 %1892 }
 0x81c   : > { %1855 = vst.msk [vmem:[#allocation3 + $0x8] sm:$0xff] %vm479_vm0, %v1852_v61 }
 0x81e   : > { %v1861_v62 = vld [vmem:[#allocation3] sm:$0xff] }
 0x81f   : > { %v2454_v54 = vpop.eup %2453  ;;  %v1873_v35 = vmul.f32 %v1866_v42, %v1861_v62 }
 0x820   : > { %1914 = vperm.xlu1 %2366, %v2454_v54  }
 0x821   : > { %1876 = vst.msk [vmem:[#allocation3] sm:$0xff] %vm1312_vm11, %v1873_v35 }
 0x823   : > { %v1862_v53 = vld [vmem:[#allocation3 + $0x8] sm:$0xff] }
 0x824   : > { %v1874_v57 = vmul.f32 %v1871_v38, %v1862_v53 }
 0x826   : > { %1877 = vst.msk [vmem:[#allocation3 + $0x8] sm:$0xff] %vm1312_vm11, %v1874_v57 }
 0x828   : > { %v1883_v40 = vld [vmem:[#allocation3] sm:$0xff] }
 0x829   : > { %v1895_v41 = vmul.f32 %v1888_v0, %v1883_v40 }
 0x82b   : > { %1898 = vst.msk [vmem:[#allocation3] sm:$0xff] %vm1570_vm12, %v1895_v41 }
 0x82d   : > { %v1884_v1 = vld [vmem:[#allocation3 + $0x8] sm:$0xff] }
 0x82e   : > { %v1896_v3 = vmul.f32 %v1893_v6, %v1884_v1 }
 0x830   : > { %1899 = vst.msk [vmem:[#allocation3 + $0x8] sm:$0xff] %vm1570_vm12, %v1896_v3 }
 0x832   : > { %v1905_v7 = vld [vmem:[#allocation3] sm:$0xff] }
 0x837   : > { %v1906_v45 = vld [vmem:[#allocation3 + $0x8] sm:$0xff] }
 0x892   : > { %v1910_v48 = vpop.permute.xlu0 %1909 }
 0x893   : > { %v1917_v51 = vmul.f32 %v1910_v48, %v1905_v7 }
 0x895   : > { %1920 = vst.msk [vmem:[#allocation3] sm:$0xff] %vm1828_vm13, %v1917_v51 }
 0x89b   : > { %v1915_v8 = vpop.permute.xlu1 %1914 }
 0x89c   : > { %v1918_v2 = vmul.f32 %v1915_v8, %v1906_v45  ;;  %v1922_v44 = vld [vmem:[#allocation3] sm:$0xff] }
 0x89d   : > { %v2172_v59 = vpack.c.bf16 %v1922_v44, %v1922_v44 }
 0x89e   : > { %1921 = vst.msk [vmem:[#allocation3 + $0x8] sm:$0xff] %vm1828_vm13, %v1918_v2 }
 0x89f   : > { %1933 = vst.msk [vmem:[%s400_s27] sm:$0xf] %vm1932_vm14, %v2172_v59 }
 0x8a5   : > { %v1923_v10 = vld [vmem:[#allocation3 + $0x8] sm:$0xff] }
 0x8a6   : > { %v2173_v4 = vpack.c.bf16 %v1923_v10, %v1923_v10 }
 0x8a8   : > { %1934 = vst.msk [vmem:[%s400_s27 + $0x4] sm:$0xf] %vm1932_vm14, %v2173_v4 }
 0x8a9   : > { %2468 = shalt.err (!%p2465_p5)
}
 0x8aa   : > { %s2469_s11 = scalar_lea.hbm %s3283_s16, 128  ;;  %s2473_s27 = scalar_lea.hbm %s3340_s6, 256 }
 0x8ab   : > { %p2470_p6 = scmp.ne.s32.totalorder %s3283_s16, %s2469_s11  ;;  %p2474_p10 = scmp.lt.s32.totalorder %s3283_s16, %s3340_s6 }
 0x8ac   : > { %p2475_p11 = scmp.lt.s32.totalorder %s2473_s27, %s2469_s11 }
 0x8ad   : > { %p2471_p7 = pnand %p2470_p6, %p2629_p4 }
 0x8ae   : > { %p2476_p12 = por %p2475_p11, %p2474_p10 }
 0x8af   : > { %p2472_p9 = pneg %p2471_p7 }
 0x8b1   : > { %p2477_p13 = pnand %p2476_p12, %p2472_p9 }
 0x8b3   : > { %2480 = shalt.err (!%p2477_p13)
}
 0x8b4   : > { %s2553_s14 = smov 4  }
 0x8b5   : > { %2255 = dma.vmem_to_hbm [thread:$0]  (%p2629_p4), %s3285_s30, 128, %s3283_s16, %s3287_s17, %s2533_s19, %s2533_s19, %s2553_s14  }
 0x8b6 PF: > { %p2261_p0 = scmp.ge.s32.totalorder %s2531_s26, 2  ;;  %s1966_s18 = sand.u32 1, %s2511_s21  }
 0x8b7   : > { %s1967_s24 = scalar_lea.sflag [#allocation7], %s1966_s18 }
 0x8b8   : > { %p2258_p1 = pnand %p2261_p0, %p2636_p8 }
 0x8ba   : > { %p2259_p2 = pneg %p2258_p1 }
 0x8bc   : > { %2506 = dma.done.wait (%p2259_p2), %s1967_s24, 128  }
 0x8bd   : > { %2508 = vsyncadd (%p2259_p2), %s1967_s24, 4294967168  ;;  %s19_s26 = sadd.s32 1, %s2531_s26   ;;  %s3343_s21 = smov %s2515_s22 }
 0x8be   : > { %p16_p3 = scmp.ge.s32.totalorder %s19_s26, 4   ;;  %s3344_s22 = smov %s2519_s23 }
 0x8bf   : > { %s3345_s23 = smov %s2642_s10  ;;  %s3346_s24 = smov %s2527_s25 }
 0x8c0   : > { %s3347_s25 = smov %s3349_s29  ;;  %18 = sbr.rel (!%p16_p3) target bundleno = 4 (0x4), region = 115 }
 0x8c5   :  { %1972 = vsyncpa [#allocation7], 1 }
 0x8c6   :  { %1974 = vsyncpa [#allocation7 + $0x1], 1 }

</bundles_post_ra>
